<compile_context>
chip_gen: v7x
topology: tpu7x:2x2x1
jax: 0.10.0
libtpu: 0.0.40
codegen_flags: <defaults>
</compile_context>

<pallas_src>
import functools

import jax
import jax.numpy as jnp
from jax.experimental import pallas as pl
from jax.experimental.pallas import tpu as pltpu

LEAKY_SLOPE = 0.01   # nn.LeakyReLU() default
IN_EPS = 1e-5        # nn.InstanceNorm2d default eps
KSIZE = 4

TK_MAX = 512                     # contraction tile (lane aligned, v7x-safe)
TP_MAX = 512                     # P tile for no-norm layers (sublane aligned)
VMEM_LIMIT = 48 * 1024 * 1024    # stays well under v7x's 64 MiB physical VMEM


def _round_up(x, m):
    return (x + m - 1) // m * m


def ck_kernel(*refs, use_norm, p_valid):
    """One K-tile step of a Ck block.

    Grid = (N, P_tiles, K_tiles); K is the reduction axis ("arbitrary").
      x_ref:   [1, tp, tk]  bf16 im2col patches
      w_ref:   [tk, C]      bf16 weight tile
      b_ref:   [1, C]       f32 bias (no-norm layers only)
      o_ref:   [1, tp, C]   output tile
      acc_ref: [tp, C]      f32 accumulator scratch
    """
    if use_norm:
        x_ref, w_ref, o_ref, acc_ref = refs
        b_ref = None
    else:
        x_ref, w_ref, b_ref, o_ref, acc_ref = refs

    k = pl.program_id(2)

    @pl.when(k == 0)
    def _():
        acc_ref[...] = jnp.zeros_like(acc_ref)

    # bf16 x bf16 -> f32 accumulate on the MXU
    acc_ref[...] += jnp.dot(x_ref[0], w_ref[...],
                            preferred_element_type=jnp.float32)

    @pl.when(k == pl.num_programs(2) - 1)
    def _():
        y = acc_ref[...]                                   # [tp, C] f32
        if use_norm:
            # InstanceNorm2d(affine=False): per-channel stats over spatial.
            # Bias is skipped (cancelled exactly by the mean subtraction), so
            # zero-padded P rows contribute 0 to both sums and dividing by the
            # true spatial size p_valid is exact. Single-pass variance.
            inv_p = 1.0 / float(p_valid)
            mean = jnp.sum(y, axis=0, keepdims=True) * inv_p
            ex2 = jnp.sum(y * y, axis=0, keepdims=True) * inv_p
            var = jnp.maximum(ex2 - mean * mean, 0.0)
            y = (y - mean) * jax.lax.rsqrt(var + IN_EPS)
        else:
            y = y + b_ref[...]
        y = jnp.maximum(y, LEAKY_SLOPE * y)                # LeakyReLU
        o_ref[0] = y.astype(o_ref.dtype)


def ck_layer(x_nhwc, weight, bias, stride, use_norm, out_dtype=jnp.bfloat16):
    """Ck block: ConstantPad2d(1, 1.0) -> Conv2d(4, s) -> [InstanceNorm2d] -> LeakyReLU.

    x_nhwc: [N, H, W, C_in]; weight: [C_out, C_in, 4, 4]; bias: [C_out].
    """
    N, H, W, C_in = x_nhwc.shape
    C_out = weight.shape[0]

    # ConstantPad2d(1, 1.0) in bf16 (1.0 is exact in bf16)
    x_bf = x_nhwc.astype(jnp.bfloat16)
    xp = jnp.pad(x_bf, ((0, 0), (1, 1), (1, 1), (0, 0)), constant_values=1.0)
    Hp, Wp = H + 2, W + 2
    Ho = (Hp - KSIZE) // stride + 1
    Wo = (Wp - KSIZE) // stride + 1

    # Host-side im2col (static strided slices) -> [N, P, K], K ordered (kh, kw, c_in)
    cols = []
    for i in range(KSIZE):
        for j in range(KSIZE):
            cols.append(
                xp[:, i:i + (Ho - 1) * stride + 1:stride,
                   j:j + (Wo - 1) * stride + 1:stride, :])
    patches = jnp.stack(cols, axis=3)                 # [N, Ho, Wo, 16, C_in]
    P = Ho * Wo
    K = KSIZE * KSIZE * C_in
    xm = patches.reshape(N, P, K)                     # bf16

    # ---- tiling / padding (sublane = 8, lane = 128 friendly) ----------------
    tk = min(_round_up(K, 128), TK_MAX)
    K_pad = _round_up(K, tk)
    if use_norm:
        tp = _round_up(P, 8)          # InstanceNorm needs the full-P reduction
    else:
        tp = min(_round_up(P, 8), TP_MAX)
    P_pad = _round_up(P, tp)
    # Lane-dense output channels when padding overhead is <= 2x (e.g. 64 -> 128);
    # the tiny final C_out=1 layer accepts masked stores instead.
    C_pad = _round_up(C_out, 128) if C_out * 2 >= 128 else C_out

    xm = jnp.pad(xm, ((0, 0), (0, P_pad - P), (0, K_pad - K)))

    wm = jnp.transpose(weight, (2, 3, 1, 0)).reshape(K, C_out)
    wm = jnp.pad(wm, ((0, K_pad - K), (0, C_pad - C_out))).astype(jnp.bfloat16)
    bm = jnp.pad(bias, (0, C_pad - C_out)).reshape(1, C_pad).astype(jnp.float32)

    grid = (N, P_pad // tp, K_pad // tk)

    in_specs = [
        pl.BlockSpec((1, tp, tk), lambda n, p, k: (n, p, k)),
        pl.BlockSpec((tk, C_pad), lambda n, p, k: (k, 0)),
    ]
    args = [xm, wm]
    if not use_norm:
        in_specs.append(pl.BlockSpec((1, C_pad), lambda n, p, k: (0, 0)))
        args.append(bm)

    out = pl.pallas_call(
        functools.partial(ck_kernel, use_norm=use_norm, p_valid=P),
        out_shape=jax.ShapeDtypeStruct((N, P_pad, C_pad), out_dtype),
        grid=grid,
        in_specs=in_specs,
        out_specs=pl.BlockSpec((1, tp, C_pad), lambda n, p, k: (n, p, 0)),
        scratch_shapes=[pltpu.VMEM((tp, C_pad), jnp.float32)],
        compiler_params=pltpu.CompilerParams(
            dimension_semantics=("parallel", "parallel", "arbitrary"),
            vmem_limit_bytes=VMEM_LIMIT),
    )(*args)

    # Drop P / C padding and restore NHWC spatial shape.
    return out[:, :P, :C_out].reshape(N, Ho, Wo, C_out)


def init_patchgan_params(key, input_nc, ndf):
    """Deterministic init mirroring PyTorch Conv2d default (uniform +/- 1/sqrt(fan_in))."""
    specs = [
        (input_nc, ndf, 2, False),        # Ck(input_nc, ndf, s=2, norm=None)
        (ndf, ndf * 2, 2, True),          # Ck(ndf, 2ndf, s=2, 'instance')
        (ndf * 2, ndf * 4, 2, True),      # Ck(2ndf, 4ndf, s=2, 'instance')
        (ndf * 4, ndf * 8, 1, True),      # Ck(4ndf, 8ndf, s=1, 'instance')
        (ndf * 8, 1, 1, False),           # Ck(8ndf, 1, s=1, norm=None)
    ]
    params = []
    for (cin, cout, s, norm) in specs:
        key, kw, kb = jax.random.split(key, 3)
        fan_in = cin * KSIZE * KSIZE
        bound = 1.0 / (fan_in ** 0.5)
        w = jax.random.uniform(kw, (cout, cin, KSIZE, KSIZE), jnp.float32,
                               minval=-bound, maxval=bound)
        b = jax.random.uniform(kb, (cout,), jnp.float32,
                               minval=-bound, maxval=bound)
        params.append((w, b, s, norm))
    return params


def patchgan_forward(x_nchw, params):
    """Full PatchGan forward. Input NCHW (PyTorch convention), output NCHW (f32)."""
    x = jnp.transpose(x_nchw, (0, 2, 3, 1))          # -> NHWC
    n_layers = len(params)
    for idx, (w, b, stride, use_norm) in enumerate(params):
        is_last = idx == n_layers - 1
        x = ck_layer(x, w, b, stride, use_norm,
                     out_dtype=jnp.float32 if is_last else jnp.bfloat16)
    return jnp.transpose(x, (0, 3, 1, 2)).astype(jnp.float32)   # -> NCHW


if __name__ == "__main__":
    key = jax.random.PRNGKey(0)
    kx, kp = jax.random.split(key)

    # Small but valid shapes: spatial 32 survives all 5 Ck blocks (32->16->8->4->3->2)
    N, C, H, W = 2, 3, 32, 32
    ndf = 8
    x = jax.random.normal(kx, (N, C, H, W), dtype=jnp.float32)
    params = init_patchgan_params(kp, C, ndf)

    fwd = jax.jit(lambda inp: patchgan_forward(inp, params))
    y = fwd(x)
    jax.block_until_ready(y)
    assert y.shape == (N, 1, 2, 2), y.shape
    print("KERNEL_OK")
</pallas_src>

<mosaic_0001>
module attributes {stable_mosaic.version = 11 : i64} {
  func.func @ck_kernel(%arg0: i32, %arg1: i32, %arg2: i32, %arg3: memref<1x256x128xbf16, #tpu.memory_space<vmem>>, %arg4: memref<128x8xbf16, #tpu.memory_space<vmem>>, %arg5: memref<1x8xf32, #tpu.memory_space<vmem>>, %arg6: memref<1x256x8xbf16, #tpu.memory_space<vmem>>, %arg7: memref<256x8xf32, #tpu.memory_space<vmem>>) attributes {dimension_semantics = [#tpu.dimension_semantics<parallel>, #tpu.dimension_semantics<parallel>, #tpu.dimension_semantics<arbitrary>], iteration_bounds = array<i64: 2, 1, 1>, scalar_prefetch = 0 : i64, scratch_operands = 1 : i64, tpu.core_type = #tpu.core_type<tc>, window_params = [{transform_indices = @transform_0, window_bounds = array<i64: 1, 256, 128>}, {transform_indices = @transform_1, window_bounds = array<i64: 128, 8>}, {pipeline_mode = #tpu.pipeline_mode<synchronous>, transform_indices = @transform_2, window_bounds = array<i64: 1, 8>}, {transform_indices = @transform_3, window_bounds = array<i64: 1, 256, 8>}]} {
    %c0_i32 = arith.constant 0 : i32
    %0 = arith.cmpi eq, %arg2, %c0_i32 : i32
    %1 = arith.extui %0 : i1 to i32
    %c0_i32_0 = arith.constant 0 : i32
    %2 = arith.cmpi ne, %1, %c0_i32_0 : i32
    scf.if %2 {
      %cst_11 = arith.constant 0.000000e+00 : f32
      %13 = vector.broadcast %cst_11 : f32 to vector<256x8xf32>
      %c0_12 = arith.constant 0 : index
      %c0_13 = arith.constant 0 : index
      %14 = vector.load %arg7[%c0_12, %c0_13] : memref<256x8xf32, #tpu.memory_space<vmem>>, vector<256x8xf32>
      tpu.vector_store %arg7[%c0_12, %c0_13], %13 {strides = array<i32>} : memref<256x8xf32, #tpu.memory_space<vmem>>, vector<256x8xf32>,
    } else {
    }
    %c0 = arith.constant 0 : index
    %c0_1 = arith.constant 0 : index
    %3 = vector.load %arg7[%c0, %c0_1] : memref<256x8xf32, #tpu.memory_space<vmem>>, vector<256x8xf32>
    %c0_2 = arith.constant 0 : index
    %c0_3 = arith.constant 0 : index
    %c0_4 = arith.constant 0 : index
    %4 = vector.load %arg3[%c0_2, %c0_3, %c0_4] : memref<1x256x128xbf16, #tpu.memory_space<vmem>>, vector<1x256x128xbf16>
    %5 = vector.shape_cast %4 : vector<1x256x128xbf16> to vector<256x128xbf16>
    %c0_5 = arith.constant 0 : index
    %c0_6 = arith.constant 0 : index
    %6 = vector.load %arg4[%c0_5, %c0_6] : memref<128x8xbf16, #tpu.memory_space<vmem>>, vector<128x8xbf16>
    %cst = arith.constant dense<0.000000e+00> : vector<256x8xf32>
    %7 = tpu.matmul %5, %6, %cst {dimension_numbers = #tpu.dot_dimension_numbers<[1], [0], [0], [1], [0, 0, 1, 1], [], []>} : vector<256x128xbf16>, vector<128x8xbf16>, vector<256x8xf32> -> vector<256x8xf32>
    %8 = arith.addf %3, %7 : vector<256x8xf32>
    %c0_7 = arith.constant 0 : index
    %c0_8 = arith.constant 0 : index
    %9 = vector.load %arg7[%c0_7, %c0_8] : memref<256x8xf32, #tpu.memory_space<vmem>>, vector<256x8xf32>
    tpu.vector_store %arg7[%c0_7, %c0_8], %8 {strides = array<i32>} : memref<256x8xf32, #tpu.memory_space<vmem>>, vector<256x8xf32>,
    %c0_i32_9 = arith.constant 0 : i32
    %10 = arith.cmpi eq, %arg2, %c0_i32_9 : i32
    %11 = arith.extui %10 : i1 to i32
    %c0_i32_10 = arith.constant 0 : i32
    %12 = arith.cmpi ne, %11, %c0_i32_10 : i32
    scf.if %12 {
      %c0_11 = arith.constant 0 : index
      %c0_12 = arith.constant 0 : index
      %13 = vector.load %arg7[%c0_11, %c0_12] : memref<256x8xf32, #tpu.memory_space<vmem>>, vector<256x8xf32>
      %c0_13 = arith.constant 0 : index
      %c0_14 = arith.constant 0 : index
      %14 = vector.load %arg5[%c0_13, %c0_14] : memref<1x8xf32, #tpu.memory_space<vmem>>, vector<1x8xf32>
      %15 = vector.broadcast %14 : vector<1x8xf32> to vector<256x8xf32>
      %16 = arith.addf %13, %15 : vector<256x8xf32>
      %cst_15 = arith.constant 0.00999999977 : f32
      %17 = vector.broadcast %cst_15 : f32 to vector<256x8xf32>
      %18 = arith.mulf %17, %16 : vector<256x8xf32>
      %19 = arith.maximumf %16, %18 : vector<256x8xf32>
      %20 = arith.truncf %19 : vector<256x8xf32> to vector<256x8xbf16>
      %c0_16 = arith.constant 0 : index
      %c0_17 = arith.constant 0 : index
      %c0_18 = arith.constant 0 : index
      %21 = vector.load %arg6[%c0_16, %c0_17, %c0_18] : memref<1x256x8xbf16, #tpu.memory_space<vmem>>, vector<1x256x8xbf16>
      %22 = vector.shape_cast %21 : vector<1x256x8xbf16> to vector<256x8xbf16>
      %23 = vector.shape_cast %20 : vector<256x8xbf16> to vector<1x256x8xbf16>
      tpu.vector_store %arg6[%c0_16, %c0_17, %c0_18], %23 {strides = array<i32>} : memref<1x256x8xbf16, #tpu.memory_space<vmem>>, vector<1x256x8xbf16>,
    } else {
    }
    return
  }
  func.func @transform_0(%arg0: i32, %arg1: i32, %arg2: i32) -> (i32, i32, i32) {
    %c0_i32 = arith.constant 0 : i32
    return %arg0, %arg1, %arg2 : i32, i32, i32
  }
  func.func @transform_1(%arg0: i32, %arg1: i32, %arg2: i32) -> (i32, i32) {
    %c0_i32 = arith.constant 0 : i32
    %c0_i32_0 = arith.constant 0 : i32
    return %arg2, %c0_i32 : i32, i32
  }
  func.func @transform_2(%arg0: i32, %arg1: i32, %arg2: i32) -> (i32, i32) {
    %c0_i32 = arith.constant 0 : i32
    %c0_i32_0 = arith.constant 0 : i32
    %c0_i32_1 = arith.constant 0 : i32
    return %c0_i32, %c0_i32_0 : i32, i32
  }
  func.func @transform_3(%arg0: i32, %arg1: i32, %arg2: i32) -> (i32, i32, i32) {
    %c0_i32 = arith.constant 0 : i32
    %c0_i32_0 = arith.constant 0 : i32
    return %arg0, %arg1, %c0_i32 : i32, i32, i32
  }
}

module attributes {stable_mosaic.version = 11 : i64} {
  func.func @ck_kernel(%arg0: i32, %arg1: i32, %arg2: i32, %arg3: memref<1x64x128xbf16, #tpu.memory_space<vmem>>, %arg4: memref<128x16xbf16, #tpu.memory_space<vmem>>, %arg5: memref<1x64x16xbf16, #tpu.memory_space<vmem>>, %arg6: memref<64x16xf32, #tpu.memory_space<vmem>>) attributes {dimension_semantics = [#tpu.dimension_semantics<parallel>, #tpu.dimension_semantics<parallel>, #tpu.dimension_semantics<arbitrary>], iteration_bounds = array<i64: 2, 1, 1>, scalar_prefetch = 0 : i64, scratch_operands = 1 : i64, tpu.core_type = #tpu.core_type<tc>, window_params = [{transform_indices = @transform_0, window_bounds = array<i64: 1, 64, 128>}, {transform_indices = @transform_1, window_bounds = array<i64: 128, 16>}, {transform_indices = @transform_2, window_bounds = array<i64: 1, 64, 16>}]} {
    %c0_i32 = arith.constant 0 : i32
    %0 = arith.cmpi eq, %arg2, %c0_i32 : i32
    %1 = arith.extui %0 : i1 to i32
    %c0_i32_0 = arith.constant 0 : i32
    %2 = arith.cmpi ne, %1, %c0_i32_0 : i32
    scf.if %2 {
      %cst_11 = arith.constant 0.000000e+00 : f32
      %13 = vector.broadcast %cst_11 : f32 to vector<64x16xf32>
      %c0_12 = arith.constant 0 : index
      %c0_13 = arith.constant 0 : index
      %14 = vector.load %arg6[%c0_12, %c0_13] : memref<64x16xf32, #tpu.memory_space<vmem>>, vector<64x16xf32>
      tpu.vector_store %arg6[%c0_12, %c0_13], %13 {strides = array<i32>} : memref<64x16xf32, #tpu.memory_space<vmem>>, vector<64x16xf32>,
    } else {
    }
    %c0 = arith.constant 0 : index
    %c0_1 = arith.constant 0 : index
    %3 = vector.load %arg6[%c0, %c0_1] : memref<64x16xf32, #tpu.memory_space<vmem>>, vector<64x16xf32>
    %c0_2 = arith.constant 0 : index
    %c0_3 = arith.constant 0 : index
    %c0_4 = arith.constant 0 : index
    %4 = vector.load %arg3[%c0_2, %c0_3, %c0_4] : memref<1x64x128xbf16, #tpu.memory_space<vmem>>, vector<1x64x128xbf16>
    %5 = vector.shape_cast %4 : vector<1x64x128xbf16> to vector<64x128xbf16>
    %c0_5 = arith.constant 0 : index
    %c0_6 = arith.constant 0 : index
    %6 = vector.load %arg4[%c0_5, %c0_6] : memref<128x16xbf16, #tpu.memory_space<vmem>>, vector<128x16xbf16>
    %cst = arith.constant dense<0.000000e+00> : vector<64x16xf32>
    %7 = tpu.matmul %5, %6, %cst {dimension_numbers = #tpu.dot_dimension_numbers<[1], [0], [0], [1], [0, 0, 1, 1], [], []>} : vector<64x128xbf16>, vector<128x16xbf16>, vector<64x16xf32> -> vector<64x16xf32>
    %8 = arith.addf %3, %7 : vector<64x16xf32>
    %c0_7 = arith.constant 0 : index
    %c0_8 = arith.constant 0 : index
    %9 = vector.load %arg6[%c0_7, %c0_8] : memref<64x16xf32, #tpu.memory_space<vmem>>, vector<64x16xf32>
    tpu.vector_store %arg6[%c0_7, %c0_8], %8 {strides = array<i32>} : memref<64x16xf32, #tpu.memory_space<vmem>>, vector<64x16xf32>,
    %c0_i32_9 = arith.constant 0 : i32
    %10 = arith.cmpi eq, %arg2, %c0_i32_9 : i32
    %11 = arith.extui %10 : i1 to i32
    %c0_i32_10 = arith.constant 0 : i32
    %12 = arith.cmpi ne, %11, %c0_i32_10 : i32
    scf.if %12 {
      %c0_11 = arith.constant 0 : index
      %c0_12 = arith.constant 0 : index
      %13 = vector.load %arg6[%c0_11, %c0_12] : memref<64x16xf32, #tpu.memory_space<vmem>>, vector<64x16xf32>
      %cst_13 = arith.constant dense<0.000000e+00> : vector<16xf32>
      %14 = vector.multi_reduction <add>, %13, %cst_13 [0] : vector<64x16xf32> to vector<16xf32>
      %15 = vector.shape_cast %14 : vector<16xf32> to vector<1x16xf32>
      %cst_14 = arith.constant 1.562500e-02 : f32
      %16 = vector.broadcast %cst_14 : f32 to vector<1x16xf32>
      %17 = arith.mulf %15, %16 : vector<1x16xf32>
      %18 = arith.mulf %13, %13 : vector<64x16xf32>
      %cst_15 = arith.constant dense<0.000000e+00> : vector<16xf32>
      %19 = vector.multi_reduction <add>, %18, %cst_15 [0] : vector<64x16xf32> to vector<16xf32>
      %20 = vector.shape_cast %19 : vector<16xf32> to vector<1x16xf32>
      %cst_16 = arith.constant 1.562500e-02 : f32
      %21 = vector.broadcast %cst_16 : f32 to vector<1x16xf32>
      %22 = arith.mulf %20, %21 : vector<1x16xf32>
      %23 = arith.mulf %17, %17 : vector<1x16xf32>
      %24 = arith.subf %22, %23 : vector<1x16xf32>
      %cst_17 = arith.constant 0.000000e+00 : f32
      %25 = vector.broadcast %cst_17 : f32 to vector<1x16xf32>
      %26 = arith.maximumf %24, %25 : vector<1x16xf32>
      %27 = vector.broadcast %17 : vector<1x16xf32> to vector<64x16xf32>
      %28 = arith.subf %13, %27 : vector<64x16xf32>
      %cst_18 = arith.constant 9.99999974E-6 : f32
      %29 = vector.broadcast %cst_18 : f32 to vector<1x16xf32>
      %30 = arith.addf %26, %29 : vector<1x16xf32>
      %31 = math.rsqrt %30 : vector<1x16xf32>
      %32 = vector.broadcast %31 : vector<1x16xf32> to vector<64x16xf32>
      %33 = arith.mulf %28, %32 : vector<64x16xf32>
      %cst_19 = arith.constant 0.00999999977 : f32
      %34 = vector.broadcast %cst_19 : f32 to vector<64x16xf32>
      %35 = arith.mulf %34, %33 : vector<64x16xf32>
      %36 = arith.maximumf %33, %35 : vector<64x16xf32>
      %37 = arith.truncf %36 : vector<64x16xf32> to vector<64x16xbf16>
      %c0_20 = arith.constant 0 : index
      %c0_21 = arith.constant 0 : index
      %c0_22 = arith.constant 0 : index
      %38 = vector.load %arg5[%c0_20, %c0_21, %c0_22] : memref<1x64x16xbf16, #tpu.memory_space<vmem>>, vector<1x64x16xbf16>
      %39 = vector.shape_cast %38 : vector<1x64x16xbf16> to vector<64x16xbf16>
      %40 = vector.shape_cast %37 : vector<64x16xbf16> to vector<1x64x16xbf16>
      tpu.vector_store %arg5[%c0_20, %c0_21, %c0_22], %40 {strides = array<i32>} : memref<1x64x16xbf16, #tpu.memory_space<vmem>>, vector<1x64x16xbf16>,
    } else {
    }
    return
  }
  func.func @transform_0(%arg0: i32, %arg1: i32, %arg2: i32) -> (i32, i32, i32) {
    %c0_i32 = arith.constant 0 : i32
    return %arg0, %arg1, %arg2 : i32, i32, i32
  }
  func.func @transform_1(%arg0: i32, %arg1: i32, %arg2: i32) -> (i32, i32) {
    %c0_i32 = arith.constant 0 : i32
    %c0_i32_0 = arith.constant 0 : i32
    return %arg2, %c0_i32 : i32, i32
  }
  func.func @transform_2(%arg0: i32, %arg1: i32, %arg2: i32) -> (i32, i32, i32) {
    %c0_i32 = arith.constant 0 : i32
    %c0_i32_0 = arith.constant 0 : i32
    return %arg0, %arg1, %c0_i32 : i32, i32, i32
  }
}

module attributes {stable_mosaic.version = 11 : i64} {
  func.func @ck_kernel(%arg0: i32, %arg1: i32, %arg2: i32, %arg3: memref<1x16x256xbf16, #tpu.memory_space<vmem>>, %arg4: memref<256x32xbf16, #tpu.memory_space<vmem>>, %arg5: memref<1x16x32xbf16, #tpu.memory_space<vmem>>, %arg6: memref<16x32xf32, #tpu.memory_space<vmem>>) attributes {dimension_semantics = [#tpu.dimension_semantics<parallel>, #tpu.dimension_semantics<parallel>, #tpu.dimension_semantics<arbitrary>], iteration_bounds = array<i64: 2, 1, 1>, scalar_prefetch = 0 : i64, scratch_operands = 1 : i64, tpu.core_type = #tpu.core_type<tc>, window_params = [{transform_indices = @transform_0, window_bounds = array<i64: 1, 16, 256>}, {transform_indices = @transform_1, window_bounds = array<i64: 256, 32>}, {transform_indices = @transform_2, window_bounds = array<i64: 1, 16, 32>}]} {
    %c0_i32 = arith.constant 0 : i32
    %0 = arith.cmpi eq, %arg2, %c0_i32 : i32
    %1 = arith.extui %0 : i1 to i32
    %c0_i32_0 = arith.constant 0 : i32
    %2 = arith.cmpi ne, %1, %c0_i32_0 : i32
    scf.if %2 {
      %cst_11 = arith.constant 0.000000e+00 : f32
      %13 = vector.broadcast %cst_11 : f32 to vector<16x32xf32>
      %c0_12 = arith.constant 0 : index
      %c0_13 = arith.constant 0 : index
      %14 = vector.load %arg6[%c0_12, %c0_13] : memref<16x32xf32, #tpu.memory_space<vmem>>, vector<16x32xf32>
      tpu.vector_store %arg6[%c0_12, %c0_13], %13 {strides = array<i32>} : memref<16x32xf32, #tpu.memory_space<vmem>>, vector<16x32xf32>,
    } else {
    }
    %c0 = arith.constant 0 : index
    %c0_1 = arith.constant 0 : index
    %3 = vector.load %arg6[%c0, %c0_1] : memref<16x32xf32, #tpu.memory_space<vmem>>, vector<16x32xf32>
    %c0_2 = arith.constant 0 : index
    %c0_3 = arith.constant 0 : index
    %c0_4 = arith.constant 0 : index
    %4 = vector.load %arg3[%c0_2, %c0_3, %c0_4] : memref<1x16x256xbf16, #tpu.memory_space<vmem>>, vector<1x16x256xbf16>
    %5 = vector.shape_cast %4 : vector<1x16x256xbf16> to vector<16x256xbf16>
    %c0_5 = arith.constant 0 : index
    %c0_6 = arith.constant 0 : index
    %6 = vector.load %arg4[%c0_5, %c0_6] : memref<256x32xbf16, #tpu.memory_space<vmem>>, vector<256x32xbf16>
    %cst = arith.constant dense<0.000000e+00> : vector<16x32xf32>
    %7 = tpu.matmul %5, %6, %cst {dimension_numbers = #tpu.dot_dimension_numbers<[1], [0], [0], [1], [0, 0, 1, 1], [], []>} : vector<16x256xbf16>, vector<256x32xbf16>, vector<16x32xf32> -> vector<16x32xf32>
    %8 = arith.addf %3, %7 : vector<16x32xf32>
    %c0_7 = arith.constant 0 : index
    %c0_8 = arith.constant 0 : index
    %9 = vector.load %arg6[%c0_7, %c0_8] : memref<16x32xf32, #tpu.memory_space<vmem>>, vector<16x32xf32>
    tpu.vector_store %arg6[%c0_7, %c0_8], %8 {strides = array<i32>} : memref<16x32xf32, #tpu.memory_space<vmem>>, vector<16x32xf32>,
    %c0_i32_9 = arith.constant 0 : i32
    %10 = arith.cmpi eq, %arg2, %c0_i32_9 : i32
    %11 = arith.extui %10 : i1 to i32
    %c0_i32_10 = arith.constant 0 : i32
    %12 = arith.cmpi ne, %11, %c0_i32_10 : i32
    scf.if %12 {
      %c0_11 = arith.constant 0 : index
      %c0_12 = arith.constant 0 : index
      %13 = vector.load %arg6[%c0_11, %c0_12] : memref<16x32xf32, #tpu.memory_space<vmem>>, vector<16x32xf32>
      %cst_13 = arith.constant dense<0.000000e+00> : vector<32xf32>
      %14 = vector.multi_reduction <add>, %13, %cst_13 [0] : vector<16x32xf32> to vector<32xf32>
      %15 = vector.shape_cast %14 : vector<32xf32> to vector<1x32xf32>
      %cst_14 = arith.constant 6.250000e-02 : f32
      %16 = vector.broadcast %cst_14 : f32 to vector<1x32xf32>
      %17 = arith.mulf %15, %16 : vector<1x32xf32>
      %18 = arith.mulf %13, %13 : vector<16x32xf32>
      %cst_15 = arith.constant dense<0.000000e+00> : vector<32xf32>
      %19 = vector.multi_reduction <add>, %18, %cst_15 [0] : vector<16x32xf32> to vector<32xf32>
      %20 = vector.shape_cast %19 : vector<32xf32> to vector<1x32xf32>
      %cst_16 = arith.constant 6.250000e-02 : f32
      %21 = vector.broadcast %cst_16 : f32 to vector<1x32xf32>
      %22 = arith.mulf %20, %21 : vector<1x32xf32>
      %23 = arith.mulf %17, %17 : vector<1x32xf32>
      %24 = arith.subf %22, %23 : vector<1x32xf32>
      %cst_17 = arith.constant 0.000000e+00 : f32
      %25 = vector.broadcast %cst_17 : f32 to vector<1x32xf32>
      %26 = arith.maximumf %24, %25 : vector<1x32xf32>
      %27 = vector.broadcast %17 : vector<1x32xf32> to vector<16x32xf32>
      %28 = arith.subf %13, %27 : vector<16x32xf32>
      %cst_18 = arith.constant 9.99999974E-6 : f32
      %29 = vector.broadcast %cst_18 : f32 to vector<1x32xf32>
      %30 = arith.addf %26, %29 : vector<1x32xf32>
      %31 = math.rsqrt %30 : vector<1x32xf32>
      %32 = vector.broadcast %31 : vector<1x32xf32> to vector<16x32xf32>
      %33 = arith.mulf %28, %32 : vector<16x32xf32>
      %cst_19 = arith.constant 0.00999999977 : f32
      %34 = vector.broadcast %cst_19 : f32 to vector<16x32xf32>
      %35 = arith.mulf %34, %33 : vector<16x32xf32>
      %36 = arith.maximumf %33, %35 : vector<16x32xf32>
      %37 = arith.truncf %36 : vector<16x32xf32> to vector<16x32xbf16>
      %c0_20 = arith.constant 0 : index
      %c0_21 = arith.constant 0 : index
      %c0_22 = arith.constant 0 : index
      %38 = vector.load %arg5[%c0_20, %c0_21, %c0_22] : memref<1x16x32xbf16, #tpu.memory_space<vmem>>, vector<1x16x32xbf16>
      %39 = vector.shape_cast %38 : vector<1x16x32xbf16> to vector<16x32xbf16>
      %40 = vector.shape_cast %37 : vector<16x32xbf16> to vector<1x16x32xbf16>
      tpu.vector_store %arg5[%c0_20, %c0_21, %c0_22], %40 {strides = array<i32>} : memref<1x16x32xbf16, #tpu.memory_space<vmem>>, vector<1x16x32xbf16>,
    } else {
    }
    return
  }
  func.func @transform_0(%arg0: i32, %arg1: i32, %arg2: i32) -> (i32, i32, i32) {
    %c0_i32 = arith.constant 0 : i32
    return %arg0, %arg1, %arg2 : i32, i32, i32
  }
  func.func @transform_1(%arg0: i32, %arg1: i32, %arg2: i32) -> (i32, i32) {
    %c0_i32 = arith.constant 0 : i32
    %c0_i32_0 = arith.constant 0 : i32
    return %arg2, %c0_i32 : i32, i32
  }
  func.func @transform_2(%arg0: i32, %arg1: i32, %arg2: i32) -> (i32, i32, i32) {
    %c0_i32 = arith.constant 0 : i32
    %c0_i32_0 = arith.constant 0 : i32
    return %arg0, %arg1, %c0_i32 : i32, i32, i32
  }
}

module attributes {stable_mosaic.version = 11 : i64} {
  func.func @ck_kernel(%arg0: i32, %arg1: i32, %arg2: i32, %arg3: memref<1x16x512xbf16, #tpu.memory_space<vmem>>, %arg4: memref<512x128xbf16, #tpu.memory_space<vmem>>, %arg5: memref<1x16x128xbf16, #tpu.memory_space<vmem>>, %arg6: memref<16x128xf32, #tpu.memory_space<vmem>>) attributes {dimension_semantics = [#tpu.dimension_semantics<parallel>, #tpu.dimension_semantics<parallel>, #tpu.dimension_semantics<arbitrary>], iteration_bounds = array<i64: 2, 1, 1>, scalar_prefetch = 0 : i64, scratch_operands = 1 : i64, tpu.core_type = #tpu.core_type<tc>, window_params = [{transform_indices = @transform_0, window_bounds = array<i64: 1, 16, 512>}, {transform_indices = @transform_1, window_bounds = array<i64: 512, 128>}, {transform_indices = @transform_2, window_bounds = array<i64: 1, 16, 128>}]} {
    %c0_i32 = arith.constant 0 : i32
    %0 = arith.cmpi eq, %arg2, %c0_i32 : i32
    %1 = arith.extui %0 : i1 to i32
    %c0_i32_0 = arith.constant 0 : i32
    %2 = arith.cmpi ne, %1, %c0_i32_0 : i32
    scf.if %2 {
      %cst_11 = arith.constant 0.000000e+00 : f32
      %13 = vector.broadcast %cst_11 : f32 to vector<16x128xf32>
      %c0_12 = arith.constant 0 : index
      %c0_13 = arith.constant 0 : index
      %14 = vector.load %arg6[%c0_12, %c0_13] : memref<16x128xf32, #tpu.memory_space<vmem>>, vector<16x128xf32>
      tpu.vector_store %arg6[%c0_12, %c0_13], %13 {strides = array<i32>} : memref<16x128xf32, #tpu.memory_space<vmem>>, vector<16x128xf32>,
    } else {
    }
    %c0 = arith.constant 0 : index
    %c0_1 = arith.constant 0 : index
    %3 = vector.load %arg6[%c0, %c0_1] : memref<16x128xf32, #tpu.memory_space<vmem>>, vector<16x128xf32>
    %c0_2 = arith.constant 0 : index
    %c0_3 = arith.constant 0 : index
    %c0_4 = arith.constant 0 : index
    %4 = vector.load %arg3[%c0_2, %c0_3, %c0_4] : memref<1x16x512xbf16, #tpu.memory_space<vmem>>, vector<1x16x512xbf16>
    %5 = vector.shape_cast %4 : vector<1x16x512xbf16> to vector<16x512xbf16>
    %c0_5 = arith.constant 0 : index
    %c0_6 = arith.constant 0 : index
    %6 = vector.load %arg4[%c0_5, %c0_6] : memref<512x128xbf16, #tpu.memory_space<vmem>>, vector<512x128xbf16>
    %cst = arith.constant dense<0.000000e+00> : vector<16x128xf32>
    %7 = tpu.matmul %5, %6, %cst {dimension_numbers = #tpu.dot_dimension_numbers<[1], [0], [0], [1], [0, 0, 1, 1], [], []>} : vector<16x512xbf16>, vector<512x128xbf16>, vector<16x128xf32> -> vector<16x128xf32>
    %8 = arith.addf %3, %7 : vector<16x128xf32>
    %c0_7 = arith.constant 0 : index
    %c0_8 = arith.constant 0 : index
    %9 = vector.load %arg6[%c0_7, %c0_8] : memref<16x128xf32, #tpu.memory_space<vmem>>, vector<16x128xf32>
    tpu.vector_store %arg6[%c0_7, %c0_8], %8 {strides = array<i32>} : memref<16x128xf32, #tpu.memory_space<vmem>>, vector<16x128xf32>,
    %c0_i32_9 = arith.constant 0 : i32
    %10 = arith.cmpi eq, %arg2, %c0_i32_9 : i32
    %11 = arith.extui %10 : i1 to i32
    %c0_i32_10 = arith.constant 0 : i32
    %12 = arith.cmpi ne, %11, %c0_i32_10 : i32
    scf.if %12 {
      %c0_11 = arith.constant 0 : index
      %c0_12 = arith.constant 0 : index
      %13 = vector.load %arg6[%c0_11, %c0_12] : memref<16x128xf32, #tpu.memory_space<vmem>>, vector<16x128xf32>
      %cst_13 = arith.constant dense<0.000000e+00> : vector<128xf32>
      %14 = vector.multi_reduction <add>, %13, %cst_13 [0] : vector<16x128xf32> to vector<128xf32>
      %15 = vector.shape_cast %14 : vector<128xf32> to vector<1x128xf32>
      %cst_14 = arith.constant 0.111111112 : f32
      %16 = vector.broadcast %cst_14 : f32 to vector<1x128xf32>
      %17 = arith.mulf %15, %16 : vector<1x128xf32>
      %18 = arith.mulf %13, %13 : vector<16x128xf32>
      %cst_15 = arith.constant dense<0.000000e+00> : vector<128xf32>
      %19 = vector.multi_reduction <add>, %18, %cst_15 [0] : vector<16x128xf32> to vector<128xf32>
      %20 = vector.shape_cast %19 : vector<128xf32> to vector<1x128xf32>
      %cst_16 = arith.constant 0.111111112 : f32
      %21 = vector.broadcast %cst_16 : f32 to vector<1x128xf32>
      %22 = arith.mulf %20, %21 : vector<1x128xf32>
      %23 = arith.mulf %17, %17 : vector<1x128xf32>
      %24 = arith.subf %22, %23 : vector<1x128xf32>
      %cst_17 = arith.constant 0.000000e+00 : f32
      %25 = vector.broadcast %cst_17 : f32 to vector<1x128xf32>
      %26 = arith.maximumf %24, %25 : vector<1x128xf32>
      %27 = vector.broadcast %17 : vector<1x128xf32> to vector<16x128xf32>
      %28 = arith.subf %13, %27 : vector<16x128xf32>
      %cst_18 = arith.constant 9.99999974E-6 : f32
      %29 = vector.broadcast %cst_18 : f32 to vector<1x128xf32>
      %30 = arith.addf %26, %29 : vector<1x128xf32>
      %31 = math.rsqrt %30 : vector<1x128xf32>
      %32 = vector.broadcast %31 : vector<1x128xf32> to vector<16x128xf32>
      %33 = arith.mulf %28, %32 : vector<16x128xf32>
      %cst_19 = arith.constant 0.00999999977 : f32
      %34 = vector.broadcast %cst_19 : f32 to vector<16x128xf32>
      %35 = arith.mulf %34, %33 : vector<16x128xf32>
      %36 = arith.maximumf %33, %35 : vector<16x128xf32>
      %37 = arith.truncf %36 : vector<16x128xf32> to vector<16x128xbf16>
      %c0_20 = arith.constant 0 : index
      %c0_21 = arith.constant 0 : index
      %c0_22 = arith.constant 0 : index
      %38 = vector.load %arg5[%c0_20, %c0_21, %c0_22] : memref<1x16x128xbf16, #tpu.memory_space<vmem>>, vector<1x16x128xbf16>
      %39 = vector.shape_cast %38 : vector<1x16x128xbf16> to vector<16x128xbf16>
      %40 = vector.shape_cast %37 : vector<16x128xbf16> to vector<1x16x128xbf16>
      tpu.vector_store %arg5[%c0_20, %c0_21, %c0_22], %40 {strides = array<i32>} : memref<1x16x128xbf16, #tpu.memory_space<vmem>>, vector<1x16x128xbf16>,
    } else {
    }
    return
  }
  func.func @transform_0(%arg0: i32, %arg1: i32, %arg2: i32) -> (i32, i32, i32) {
    %c0_i32 = arith.constant 0 : i32
    return %arg0, %arg1, %arg2 : i32, i32, i32
  }
  func.func @transform_1(%arg0: i32, %arg1: i32, %arg2: i32) -> (i32, i32) {
    %c0_i32 = arith.constant 0 : i32
    %c0_i32_0 = arith.constant 0 : i32
    return %arg2, %c0_i32 : i32, i32
  }
  func.func @transform_2(%arg0: i32, %arg1: i32, %arg2: i32) -> (i32, i32, i32) {
    %c0_i32 = arith.constant 0 : i32
    %c0_i32_0 = arith.constant 0 : i32
    return %arg0, %arg1, %c0_i32 : i32, i32, i32
  }
}

module attributes {stable_mosaic.version = 11 : i64} {
  func.func @ck_kernel(%arg0: i32, %arg1: i32, %arg2: i32, %arg3: memref<1x8x512xbf16, #tpu.memory_space<vmem>>, %arg4: memref<512x1xbf16, #tpu.memory_space<vmem>>, %arg5: memref<1x1xf32, #tpu.memory_space<vmem>>, %arg6: memref<1x8x1xf32, #tpu.memory_space<vmem>>, %arg7: memref<8x1xf32, #tpu.memory_space<vmem>>) attributes {dimension_semantics = [#tpu.dimension_semantics<parallel>, #tpu.dimension_semantics<parallel>, #tpu.dimension_semantics<arbitrary>], iteration_bounds = array<i64: 2, 1, 2>, scalar_prefetch = 0 : i64, scratch_operands = 1 : i64, tpu.core_type = #tpu.core_type<tc>, window_params = [{transform_indices = @transform_0, window_bounds = array<i64: 1, 8, 512>}, {transform_indices = @transform_1, window_bounds = array<i64: 512, 1>}, {pipeline_mode = #tpu.pipeline_mode<synchronous>, transform_indices = @transform_2, window_bounds = array<i64: 1, 1>}, {transform_indices = @transform_3, window_bounds = array<i64: 1, 8, 1>}]} {
    %c0_i32 = arith.constant 0 : i32
    %0 = arith.cmpi eq, %arg2, %c0_i32 : i32
    %1 = arith.extui %0 : i1 to i32
    %c0_i32_0 = arith.constant 0 : i32
    %2 = arith.cmpi ne, %1, %c0_i32_0 : i32
    scf.if %2 {
      %cst_10 = arith.constant 0.000000e+00 : f32
      %13 = vector.broadcast %cst_10 : f32 to vector<8x1xf32>
      %c0_11 = arith.constant 0 : index
      %c0_12 = arith.constant 0 : index
      %14 = vector.load %arg7[%c0_11, %c0_12] : memref<8x1xf32, #tpu.memory_space<vmem>>, vector<8x1xf32>
      tpu.vector_store %arg7[%c0_11, %c0_12], %13 {strides = array<i32>} : memref<8x1xf32, #tpu.memory_space<vmem>>, vector<8x1xf32>,
    } else {
    }
    %c0 = arith.constant 0 : index
    %c0_1 = arith.constant 0 : index
    %3 = vector.load %arg7[%c0, %c0_1] : memref<8x1xf32, #tpu.memory_space<vmem>>, vector<8x1xf32>
    %c0_2 = arith.constant 0 : index
    %c0_3 = arith.constant 0 : index
    %c0_4 = arith.constant 0 : index
    %4 = vector.load %arg3[%c0_2, %c0_3, %c0_4] : memref<1x8x512xbf16, #tpu.memory_space<vmem>>, vector<1x8x512xbf16>
    %5 = vector.shape_cast %4 : vector<1x8x512xbf16> to vector<8x512xbf16>
    %c0_5 = arith.constant 0 : index
    %c0_6 = arith.constant 0 : index
    %6 = vector.load %arg4[%c0_5, %c0_6] : memref<512x1xbf16, #tpu.memory_space<vmem>>, vector<512x1xbf16>
    %cst = arith.constant dense<0.000000e+00> : vector<8x1xf32>
    %7 = tpu.matmul %5, %6, %cst {dimension_numbers = #tpu.dot_dimension_numbers<[1], [0], [0], [1], [0, 0, 1, 1], [], []>} : vector<8x512xbf16>, vector<512x1xbf16>, vector<8x1xf32> -> vector<8x1xf32>
    %8 = arith.addf %3, %7 : vector<8x1xf32>
    %c0_7 = arith.constant 0 : index
    %c0_8 = arith.constant 0 : index
    %9 = vector.load %arg7[%c0_7, %c0_8] : memref<8x1xf32, #tpu.memory_space<vmem>>, vector<8x1xf32>
    tpu.vector_store %arg7[%c0_7, %c0_8], %8 {strides = array<i32>} : memref<8x1xf32, #tpu.memory_space<vmem>>, vector<8x1xf32>,
    %c1_i32 = arith.constant 1 : i32
    %10 = arith.cmpi eq, %arg2, %c1_i32 : i32
    %11 = arith.extui %10 : i1 to i32
    %c0_i32_9 = arith.constant 0 : i32
    %12 = arith.cmpi ne, %11, %c0_i32_9 : i32
    scf.if %12 {
      %c0_10 = arith.constant 0 : index
      %c0_11 = arith.constant 0 : index
      %13 = vector.load %arg7[%c0_10, %c0_11] : memref<8x1xf32, #tpu.memory_space<vmem>>, vector<8x1xf32>
      %c0_12 = arith.constant 0 : index
      %c0_13 = arith.constant 0 : index
      %14 = vector.load %arg5[%c0_12, %c0_13] : memref<1x1xf32, #tpu.memory_space<vmem>>, vector<1x1xf32>
      %15 = vector.broadcast %14 : vector<1x1xf32> to vector<8x1xf32>
      %16 = arith.addf %13, %15 : vector<8x1xf32>
      %cst_14 = arith.constant 0.00999999977 : f32
      %17 = vector.broadcast %cst_14 : f32 to vector<8x1xf32>
      %18 = arith.mulf %17, %16 : vector<8x1xf32>
      %19 = arith.maximumf %16, %18 : vector<8x1xf32>
      %c0_15 = arith.constant 0 : index
      %c0_16 = arith.constant 0 : index
      %c0_17 = arith.constant 0 : index
      %20 = vector.load %arg6[%c0_15, %c0_16, %c0_17] : memref<1x8x1xf32, #tpu.memory_space<vmem>>, vector<1x8x1xf32>
      %21 = vector.shape_cast %20 : vector<1x8x1xf32> to vector<8x1xf32>
      %22 = vector.shape_cast %19 : vector<8x1xf32> to vector<1x8x1xf32>
      tpu.vector_store %arg6[%c0_15, %c0_16, %c0_17], %22 {strides = array<i32>} : memref<1x8x1xf32, #tpu.memory_space<vmem>>, vector<1x8x1xf32>,
    } else {
    }
    return
  }
  func.func @transform_0(%arg0: i32, %arg1: i32, %arg2: i32) -> (i32, i32, i32) {
    %c0_i32 = arith.constant 0 : i32
    return %arg0, %arg1, %arg2 : i32, i32, i32
  }
  func.func @transform_1(%arg0: i32, %arg1: i32, %arg2: i32) -> (i32, i32) {
    %c0_i32 = arith.constant 0 : i32
    %c0_i32_0 = arith.constant 0 : i32
    return %arg2, %c0_i32 : i32, i32
  }
  func.func @transform_2(%arg0: i32, %arg1: i32, %arg2: i32) -> (i32, i32) {
    %c0_i32 = arith.constant 0 : i32
    %c0_i32_0 = arith.constant 0 : i32
    %c0_i32_1 = arith.constant 0 : i32
    return %c0_i32, %c0_i32_0 : i32, i32
  }
  func.func @transform_3(%arg0: i32, %arg1: i32, %arg2: i32) -> (i32, i32, i32) {
    %c0_i32 = arith.constant 0 : i32
    %c0_i32_0 = arith.constant 0 : i32
    return %arg0, %arg1, %c0_i32 : i32, i32, i32
  }
}

</mosaic_0001>

<bundles_post_ra>
// kernel: _lambda_.5
= control target key start
LH: loop header
LB: loop body
LE: loop exit
PB: predicated region body
PF: predicated region fallthrough
CT: control target
= control target key end

     0   :  { %s1430_s12 = smov 0   ;;  %s1432_s13 = smov 0   ;;  %s1703_s0 = inlined_call_operand.vmem [shape: bf16[2,256,128], index: 0, kind: input, shape index: {}]   ;;  %s1704_s1 = inlined_call_operand.vmem [shape: bf16[128,8], index: 1, kind: input, shape index: {}]   ;;  %s1705_s2 = inlined_call_operand.vmem [shape: f32[1,8], index: 2, kind: input, shape index: {}]   ;;  %s1706_s3 = inlined_call_operand.vmem [shape: bf16[2,256,8], index: 3, kind: output, shape index: {}]  }
   0x1   :  { %s1434_s14 = smov 0  }
   0x2 LB: > { %s32_s15 = sadd.s32 1, %s1403_s13  ;;  %p1150_p0 = scmp.ge.s32.totalorder %s1407_s14, 1  ;;  %s1407_s14 = sphi %s1434_s14, %s13_s14   ;;  %s1403_s13 = sphi %s1432_s13, %s1708_s13   ;;  %s1399_s12 = sphi %s1430_s12, %s1707_s12  }
   0x3   : > { %p34_p1 = scmp.ge.s32.totalorder %s32_s15, 2  ;;  %p181_p2 = scmp.lt.s32.totalorder %s1407_s14, 3 }
   0x5   : > { %s1710_s15 = smov (%p34_p1, %s32_s15), 0  ;;  %p182_p3 = pnand %p1150_p0, %p181_p2 }
   0x6   : > { %v1361_v0 = vld [vmem:[%s1704_s1] sm:$0xff] (!%p182_p3)   ;;  %p222_p4 = scmp.lt.s32.totalorder (!%p182_p3), %s1399_s12, 1  ;;  %v1362_v1 = vld [vmem:[%s1704_s1 + $0x8] sm:$0xff] (!%p182_p3)   ;;  %vm255_vm0 = vcmask (!%p182_p3), 64512   ;;  %v1363_v2 = vld [vmem:[%s1704_s1 + $0x10] sm:$0xff] (!%p182_p3)   ;;  %v1409_v3 = vmov (!%p182_p3), 0.0  }
   0x7   : > { %185 = sbr.rel (%p182_p3) target bundleno = 311 (0x137), region = 32  ;;  %1272 = vmatprep.subr.bf16.mxu0 (!%p182_p3), %v1361_v0  ;;  %1320 = vmatprep.subr.bf16.mxu1 (!%p182_p3), %v1361_v0  ;;  %258 = vst.msk [vmem:[#allocation2 + $0x10] sm:$0xff] (!%p182_p3), %vm255_vm0, %v1409_v3  ;;  %256 = vst.msk [vmem:[#allocation2] sm:$0xff] (!%p182_p3), %vm255_vm0, %v1409_v3  ;;  %v1364_v4 = vld [vmem:[%s1704_s1 + $0x18] sm:$0xff] (!%p182_p3)   ;;  %v1365_v7 = vld [vmem:[%s1704_s1 + $0x20] sm:$0xff] (!%p182_p3)   ;;  %vm1004_vm1 = vcmask (!%p182_p3), 60416  }
   0x8   : > { %1273 = vmatpush3.bf16.msra.mxu0 (!%p182_p3), %v1361_v0  ;;  %1328 = vmatpush3.bf16.msra.mxu1 (!%p182_p3), %v1361_v0  ;;  %257 = vst.msk [vmem:[#allocation2 + $0x8] sm:$0xff] (!%p182_p3), %vm255_vm0, %v1409_v3  ;;  %259 = vst.msk [vmem:[#allocation2 + $0x18] sm:$0xff] (!%p182_p3), %vm255_vm0, %v1409_v3  ;;  %v1366_v8 = vld [vmem:[%s1704_s1 + $0x28] sm:$0xff] (!%p182_p3)   ;;  %v1367_v9 = vld [vmem:[%s1704_s1 + $0x30] sm:$0xff] (!%p182_p3)  }
   0x9   : > { %1274 = vmatprep.subr.bf16.mxu0 (!%p182_p3), %v1362_v1  ;;  %1321 = vmatprep.subr.bf16.mxu1 (!%p182_p3), %v1362_v1  ;;  %260 = vst.msk [vmem:[#allocation2 + $0x20] sm:$0xff] (!%p182_p3), %vm255_vm0, %v1409_v3  ;;  %261 = vst.msk [vmem:[#allocation2 + $0x28] sm:$0xff] (!%p182_p3), %vm255_vm0, %v1409_v3  ;;  %v1368_v10 = vld [vmem:[%s1704_s1 + $0x38] sm:$0xff] (!%p182_p3)   ;;  %v1541_v53 = vld [vmem:[%s1705_s2] ss:$0 sm:$0xff] (!%p182_p3) }
   0xa   : > { %262 = vst.msk [vmem:[#allocation2 + $0x30] sm:$0xff] (!%p182_p3), %vm255_vm0, %v1409_v3  ;;  %263 = vst.msk [vmem:[#allocation2 + $0x38] sm:$0xff] (!%p182_p3), %vm255_vm0, %v1409_v3 }
   0xb   : > { %264 = vst.msk [vmem:[#allocation2 + $0x40] sm:$0xff] (!%p182_p3), %vm255_vm0, %v1409_v3  ;;  %265 = vst.msk [vmem:[#allocation2 + $0x48] sm:$0xff] (!%p182_p3), %vm255_vm0, %v1409_v3 }
   0xc   : > { %266 = vst.msk [vmem:[#allocation2 + $0x50] sm:$0xff] (!%p182_p3), %vm255_vm0, %v1409_v3  ;;  %267 = vst.msk [vmem:[#allocation2 + $0x58] sm:$0xff] (!%p182_p3), %vm255_vm0, %v1409_v3  ;;  %1275 = vmatpush3.bf16.msra.mxu0 (!%p182_p3), %v1362_v1  ;;  %1329 = vmatpush3.bf16.msra.mxu1 (!%p182_p3), %v1362_v1 }
   0xd   : > { %268 = vst.msk [vmem:[#allocation2 + $0x60] sm:$0xff] (!%p182_p3), %vm255_vm0, %v1409_v3  ;;  %269 = vst.msk [vmem:[#allocation2 + $0x68] sm:$0xff] (!%p182_p3), %vm255_vm0, %v1409_v3  ;;  %1276 = vmatprep.subr.bf16.mxu0 (!%p182_p3), %v1363_v2  ;;  %1322 = vmatprep.subr.bf16.mxu1 (!%p182_p3), %v1363_v2 }
   0xe   : > { %s1712_s12 = smov (!%p222_p4, %s1399_s12), 1  ;;  %270 = vst.msk [vmem:[#allocation2 + $0x70] sm:$0xff] %vm255_vm0, %v1409_v3  ;;  %271 = vst.msk [vmem:[#allocation2 + $0x78] sm:$0xff] %vm255_vm0, %v1409_v3  ;;  %v290_v25 = vld [vmem:[#allocation2 + $0x10] sm:$0xff]  ;;  %v288_v27 = vld [vmem:[#allocation2] sm:$0xff] }
   0xf   : > { %s1214_s22 = sshll.u32 %s1712_s12, 7  ;;  %272 = vst.msk [vmem:[#allocation2 + $0x80] sm:$0xff] %vm255_vm0, %v1409_v3  ;;  %273 = vst.msk [vmem:[#allocation2 + $0x88] sm:$0xff] %vm255_vm0, %v1409_v3  ;;  %v291_v31 = vld [vmem:[#allocation2 + $0x18] sm:$0xff]  ;;  %v289_v37 = vld [vmem:[#allocation2 + $0x8] sm:$0xff] }
  0x10   : > { %274 = vst.msk [vmem:[#allocation2 + $0x90] sm:$0xff] %vm255_vm0, %v1409_v3  ;;  %275 = vst.msk [vmem:[#allocation2 + $0x98] sm:$0xff] %vm255_vm0, %v1409_v3  ;;  %s1497_s25 = scalar_lea.vmem %s1703_s0, %s1214_s22  ;;  %1277 = vmatpush3.bf16.msra.mxu0 %v1363_v2  ;;  %1330 = vmatpush3.bf16.msra.mxu1 %v1363_v2  ;;  %v292_v51 = vld [vmem:[#allocation2 + $0x20] sm:$0xff]  ;;  %v293_v62 = vld [vmem:[#allocation2 + $0x28] sm:$0xff]  ;;  %s1564_s17 = scalar_lea.vmem %s1706_s3, %s1214_s22 }
  0x11   : > { %276 = vst.msk [vmem:[#allocation2 + $0xa0] sm:$0xff] %vm255_vm0, %v1409_v3  ;;  %277 = vst.msk [vmem:[#allocation2 + $0xa8] sm:$0xff] %vm255_vm0, %v1409_v3  ;;  %v1369_v5 = vld [vmem:[%s1497_s25] sm:$0xff]   ;;  %1278 = vmatprep.subr.bf16.mxu0 %v1364_v4  ;;  %1323 = vmatprep.subr.bf16.mxu1 %v1364_v4  ;;  %v1371_v11 = vld [vmem:[%s1497_s25 + $0x8] sm:$0xff]  }
  0x12   : > { %278 = vst.msk [vmem:[#allocation2 + $0xb0] sm:$0xff] %vm255_vm0, %v1409_v3  ;;  %279 = vst.msk [vmem:[#allocation2 + $0xb8] sm:$0xff] %vm255_vm0, %v1409_v3  ;;  %v1370_v6 = vld [vmem:[%s1497_s25 + $0x40] sm:$0xff]   ;;  %1288 = vmatprep.mubr.bf16.mxu0 %v1369_v5  ;;  %v1372_v12 = vld [vmem:[%s1497_s25 + $0x48] sm:$0xff]  }
  0x13   : > { %280 = vst.msk [vmem:[#allocation2 + $0xc0] sm:$0xff] %vm255_vm0, %v1409_v3  ;;  %281 = vst.msk [vmem:[#allocation2 + $0xc8] sm:$0xff] %vm255_vm0, %v1409_v3  ;;  %1304 = vmatprep.mubr.bf16.mxu1 %v1370_v6  ;;  %v1373_v13 = vld [vmem:[%s1497_s25 + $0x10] sm:$0xff]   ;;  %v1375_v15 = vld [vmem:[%s1497_s25 + $0x18] sm:$0xff]  }
  0x14   : > { %282 = vst.msk [vmem:[#allocation2 + $0xd0] sm:$0xff] %vm255_vm0, %v1409_v3  ;;  %283 = vst.msk [vmem:[#allocation2 + $0xd8] sm:$0xff] %vm255_vm0, %v1409_v3  ;;  %1279 = vmatpush3.bf16.msra.mxu0 %v1364_v4  ;;  %1331 = vmatpush3.bf16.msra.mxu1 %v1364_v4  ;;  %v1374_v14 = vld [vmem:[%s1497_s25 + $0x50] sm:$0xff]   ;;  %v1376_v16 = vld [vmem:[%s1497_s25 + $0x58] sm:$0xff]  }
  0x15   : > { %284 = vst.msk [vmem:[#allocation2 + $0xe0] sm:$0xff] %vm255_vm0, %v1409_v3  ;;  %285 = vst.msk [vmem:[#allocation2 + $0xe8] sm:$0xff] %vm255_vm0, %v1409_v3  ;;  %1280 = vmatprep.subr.bf16.mxu0 %v1365_v7  ;;  %1324 = vmatprep.subr.bf16.mxu1 %v1365_v7  ;;  %v1377_v17 = vld [vmem:[%s1497_s25 + $0x20] sm:$0xff]   ;;  %v1379_v19 = vld [vmem:[%s1497_s25 + $0x28] sm:$0xff]  }
  0x16   : > { %286 = vst.msk [vmem:[#allocation2 + $0xf0] sm:$0xff] %vm255_vm0, %v1409_v3  ;;  %287 = vst.msk [vmem:[#allocation2 + $0xf8] sm:$0xff] %vm255_vm0, %v1409_v3  ;;  %v1378_v18 = vld [vmem:[%s1497_s25 + $0x60] sm:$0xff]   ;;  %v1380_v20 = vld [vmem:[%s1497_s25 + $0x68] sm:$0xff]  }
  0x17   : > { %v1381_v21 = vld [vmem:[%s1497_s25 + $0x30] sm:$0xff]   ;;  %v1383_v23 = vld [vmem:[%s1497_s25 + $0x38] sm:$0xff]   ;;  %v304_v28 = vld [vmem:[#allocation2 + $0x80] sm:$0xff] }
  0x18   : > { %1281 = vmatpush3.bf16.msra.mxu0 %v1365_v7  ;;  %1332 = vmatpush3.bf16.msra.mxu1 %v1365_v7  ;;  %v1382_v22 = vld [vmem:[%s1497_s25 + $0x70] sm:$0xff]   ;;  %v1384_v24 = vld [vmem:[%s1497_s25 + $0x78] sm:$0xff]   ;;  %v305_v38 = vld [vmem:[#allocation2 + $0x88] sm:$0xff] }
  0x19   : > { %1282 = vmatprep.subr.bf16.mxu0 %v1366_v8  ;;  %1325 = vmatprep.subr.bf16.mxu1 %v1366_v8  ;;  %v306_v26 = vld [vmem:[#allocation2 + $0x90] sm:$0xff]  ;;  %v307_v32 = vld [vmem:[#allocation2 + $0x98] sm:$0xff]  ;;  %v308_v52 = vld [vmem:[#allocation2 + $0xa0] sm:$0xff] }
  0x1a   : > { %v294_v49 = vld [vmem:[#allocation2 + $0x30] sm:$0xff]  ;;  %v295_v56 = vld [vmem:[#allocation2 + $0x38] sm:$0xff]  ;;  %v309_v63 = vld [vmem:[#allocation2 + $0xa8] sm:$0xff] }
  0x1b   : > { %v310_v50 = vld [vmem:[#allocation2 + $0xb0] sm:$0xff]  ;;  %v311_v57 = vld [vmem:[#allocation2 + $0xb8] sm:$0xff] }
  0x1c   : > { %1283 = vmatpush3.bf16.msra.mxu0 %v1366_v8  ;;  %1333 = vmatpush3.bf16.msra.mxu1 %v1366_v8 }
  0x1d   : > { %1284 = vmatprep.subr.bf16.mxu0 %v1367_v9  ;;  %1326 = vmatprep.subr.bf16.mxu1 %v1367_v9 }
  0x20   : > { %1285 = vmatpush3.bf16.msra.mxu0 %v1367_v9  ;;  %1334 = vmatpush3.bf16.msra.mxu1 %v1367_v9 }
  0x21   : > { %1286 = vmatprep.subr.bf16.mxu0 %v1368_v10  ;;  %1327 = vmatprep.subr.bf16.mxu1 %v1368_v10 }
  0x24   : > { %1287 = vmatpush3.bf16.msra.mxu0 %v1368_v10  ;;  %1335 = vmatpush3.bf16.msra.mxu1 %v1368_v10 }
  0x27   : > { %1289 = vmatmul.mubr.bf16.vlgmr.msra.gmra.mrb[0].mxu0 %v1371_v11  ;;  %1305 = vmatmul.mubr.bf16.vlgmr.msra.gmra.mrb[0].mxu1 %v1372_v12 }
  0x28   : > { %1292 = vmatprep.mubr.bf16.mxu0 %v1373_v13  ;;  %1308 = vmatprep.mubr.bf16.mxu1 %v1374_v14 }
  0x2f   : > { %1293 = vmatmul.mubr.bf16.gmra.mrb[4].mxu0 %v1375_v15  ;;  %1309 = vmatmul.mubr.bf16.gmra.mrb[4].mxu1 %v1376_v16 }
  0x30   : > { %1296 = vmatprep.mubr.bf16.mxu0 %v1377_v17  ;;  %1312 = vmatprep.mubr.bf16.mxu1 %v1378_v18 }
  0x37   : > { %1297 = vmatmul.mubr.bf16.gmra.mrb[8].mxu0 %v1379_v19  ;;  %1313 = vmatmul.mubr.bf16.gmra.mrb[8].mxu1 %v1380_v20 }
  0x38   : > { %1300 = vmatprep.mubr.bf16.mxu0 %v1381_v21  ;;  %1316 = vmatprep.mubr.bf16.mxu1 %v1382_v22 }
  0x3f   : > { %1301 = vmatmul.mubr.bf16.gmra.mrb[12].mxu0 %v1383_v23  ;;  %1317 = vmatmul.mubr.bf16.gmra.mrb[12].mxu1 %v1384_v24 }
  0xfa   : > { %v1290_v29 = vpop.f32.mrb[0].mxu0  ;;  %v1306_v30 = vpop.f32.mrb[0].mxu1 }
  0xfb   : > { %v675_v33 = vadd.f32 %v1290_v29, %v290_v25  ;;  %v691_v34 = vadd.f32 %v1306_v30, %v306_v26  ;;  %v546_v35 = vpop.f32.mrb[1].mxu0  ;;  %v610_v36 = vpop.f32.mrb[1].mxu1 }
  0xfc   : > { %v673_v39 = vadd.f32 %v546_v35, %v288_v27  ;;  %v689_v40 = vadd.f32 %v610_v36, %v304_v28  ;;  %v1291_v41 = vpop.f32.mrb[2].mxu0  ;;  %v1307_v42 = vpop.f32.mrb[2].mxu1 }
  0xfd   : > { %708 = vst.msk [vmem:[#allocation2 + $0x10] sm:$0xff] %vm255_vm0, %v675_v33  ;;  %724 = vst.msk [vmem:[#allocation2 + $0x90] sm:$0xff] %vm255_vm0, %v691_v34  ;;  %v676_v43 = vadd.f32 %v1291_v41, %v291_v31  ;;  %v692_v44 = vadd.f32 %v1307_v42, %v307_v32  ;;  %v549_v45 = vpop.f32.mrb[3].mxu0  ;;  %v613_v46 = vpop.f32.mrb[3].mxu1 }
  0xfe   : > { %706 = vst.msk [vmem:[#allocation2] sm:$0xff] %vm255_vm0, %v673_v39  ;;  %722 = vst.msk [vmem:[#allocation2 + $0x80] sm:$0xff] %vm255_vm0, %v689_v40  ;;  %v674_v47 = vadd.f32 %v549_v45, %v289_v37  ;;  %v690_v48 = vadd.f32 %v613_v46, %v305_v38 }
  0xff   : > { %709 = vst.msk [vmem:[#allocation2 + $0x18] sm:$0xff] %vm255_vm0, %v676_v43  ;;  %725 = vst.msk [vmem:[#allocation2 + $0x98] sm:$0xff] %vm255_vm0, %v692_v44 }
 0x100   : > { %707 = vst.msk [vmem:[#allocation2 + $0x8] sm:$0xff] %vm255_vm0, %v674_v47  ;;  %723 = vst.msk [vmem:[#allocation2 + $0x88] sm:$0xff] %vm255_vm0, %v690_v48 }
 0x102   : > { %v1294_v54 = vpop.f32.mrb[4].mxu0  ;;  %v1310_v55 = vpop.f32.mrb[4].mxu1 }
 0x103   : > { %v679_v58 = vadd.f32 %v1294_v54, %v294_v49  ;;  %v695_v59 = vadd.f32 %v1310_v55, %v310_v50  ;;  %v562_v60 = vpop.f32.mrb[5].mxu0  ;;  %v626_v61 = vpop.f32.mrb[5].mxu1 }
 0x104   : > { %v743_v0 = vld [vmem:[#allocation2 + $0x10] sm:$0xff]  ;;  %v677_v2 = vadd.f32 %v562_v60, %v292_v51  ;;  %v693_v3 = vadd.f32 %v626_v61, %v308_v52  ;;  %v1295_v4 = vpop.f32.mrb[6].mxu0  ;;  %v1311_v5 = vpop.f32.mrb[6].mxu1 }
 0x105   : > { %v759_v1 = vld [vmem:[#allocation2 + $0x90] sm:$0xff]  ;;  %v782_v6 = vadd.f32 %v1541_v53, %v743_v0  ;;  %v741_v8 = vld [vmem:[#allocation2] sm:$0xff]  ;;  %712 = vst.msk [vmem:[#allocation2 + $0x30] sm:$0xff] %vm255_vm0, %v679_v58  ;;  %728 = vst.msk [vmem:[#allocation2 + $0xb0] sm:$0xff] %vm255_vm0, %v695_v59  ;;  %v680_v10 = vadd.f32 %v1295_v4, %v295_v56  ;;  %v696_v11 = vadd.f32 %v1311_v5, %v311_v57  ;;  %v565_v12 = vpop.f32.mrb[7].mxu0  ;;  %v629_v13 = vpop.f32.mrb[7].mxu1 }
 0x106   : > { %v798_v7 = vadd.f32 %v1541_v53, %v759_v1  ;;  %v757_v9 = vld [vmem:[#allocation2 + $0x80] sm:$0xff]  ;;  %v780_v14 = vadd.f32 %v1541_v53, %v741_v8  ;;  %v744_v16 = vld [vmem:[#allocation2 + $0x18] sm:$0xff]  ;;  %710 = vst.msk [vmem:[#allocation2 + $0x20] sm:$0xff] %vm255_vm0, %v677_v2  ;;  %726 = vst.msk [vmem:[#allocation2 + $0xa0] sm:$0xff] %vm255_vm0, %v693_v3  ;;  %v678_v18 = vadd.f32 %v565_v12, %v293_v62 }
 0x107   : > { %v796_v15 = vadd.f32 %v1541_v53, %v757_v9  ;;  %v760_v17 = vld [vmem:[#allocation2 + $0x98] sm:$0xff]  ;;  %v694_v19 = vadd.f32 %v629_v13, %v309_v63  ;;  %v814_v20 = vmul.f32 0.01, %v782_v6  ;;  %v783_v22 = vadd.f32 %v1541_v53, %v744_v16  ;;  %v742_v24 = vld [vmem:[#allocation2 + $0x8] sm:$0xff]  ;;  %713 = vst.msk [vmem:[#allocation2 + $0x38] sm:$0xff] %vm255_vm0, %v680_v10  ;;  %729 = vst.msk [vmem:[#allocation2 + $0xb8] sm:$0xff] %vm255_vm0, %v696_v11 }
 0x108   : > { %v830_v21 = vmul.f32 0.01, %v798_v7  ;;  %v799_v23 = vadd.f32 %v1541_v53, %v760_v17  ;;  %v758_v25 = vld [vmem:[#allocation2 + $0x88] sm:$0xff]  ;;  %v812_v26 = vmul.f32 0.01, %v780_v14  ;;  %v781_v28 = vadd.f32 %v1541_v53, %v742_v24  ;;  %711 = vst.msk [vmem:[#allocation2 + $0x28] sm:$0xff] %vm255_vm0, %v678_v18 }
 0x109   : > { %v828_v27 = vmul.f32 0.01, %v796_v15  ;;  %v797_v29 = vadd.f32 %v1541_v53, %v758_v25  ;;  %727 = vst.msk [vmem:[#allocation2 + $0xa8] sm:$0xff] %vm255_vm0, %v694_v19  ;;  %v846_v30 = vmax.f32 %v782_v6, %v814_v20  ;;  %v815_v32 = vmul.f32 0.01, %v783_v22  ;;  %v314_v16 = vld [vmem:[#allocation2 + $0xd0] sm:$0xff] }
 0x10a   : > { %v862_v31 = vmax.f32 %v798_v7, %v830_v21  ;;  %v831_v33 = vmul.f32 0.01, %v799_v23  ;;  %v844_v34 = vmax.f32 %v780_v14, %v812_v26  ;;  %v813_v36 = vmul.f32 0.01, %v781_v28  ;;  %v1566_v38 = vpop.f32.mrb[8].mxu0  ;;  %v1568_v39 = vpop.f32.mrb[8].mxu1 }
 0x10b   : > { %v860_v35 = vmax.f32 %v796_v15, %v828_v27  ;;  %v829_v37 = vmul.f32 0.01, %v797_v29  ;;  %v1218_v40 = vpack.c.bf16 %v846_v30, %v846_v30  ;;  %v847_v42 = vmax.f32 %v783_v22, %v815_v32  ;;  %v1570_v44 = vpop.f32.mrb[9].mxu0  ;;  %v1572_v45 = vpop.f32.mrb[9].mxu1  ;;  %v298_v15 = vld [vmem:[#allocation2 + $0x50] sm:$0xff]  ;;  %v296_v21 = vld [vmem:[#allocation2 + $0x40] sm:$0xff] }
 0x10c   : > { %v1234_v41 = vpack.c.bf16 %v862_v31, %v862_v31  ;;  %v863_v43 = vmax.f32 %v799_v23, %v831_v33  ;;  %v1216_v46 = vpack.c.bf16 %v844_v34, %v844_v34  ;;  %v845_v48 = vmax.f32 %v781_v28, %v813_v36  ;;  %v747_v50 = vld [vmem:[#allocation2 + $0x30] sm:$0xff]  ;;  %v1574_v52 = vpop.f32.mrb[10].mxu0  ;;  %v1576_v54 = vpop.f32.mrb[10].mxu1  ;;  %v312_v22 = vld [vmem:[#allocation2 + $0xc0] sm:$0xff]  ;;  %v299_v33 = vld [vmem:[#allocation2 + $0x58] sm:$0xff] }
 0x10d   : > { %v1232_v47 = vpack.c.bf16 %v860_v35, %v860_v35  ;;  %v861_v49 = vmax.f32 %v797_v29, %v829_v37  ;;  %v763_v51 = vld [vmem:[#allocation2 + $0xb0] sm:$0xff]  ;;  %1007 = vst.msk [vmem:[%s1564_s17 + $0x8] sm:$0xf] %vm1004_vm1, %v1218_v40  ;;  %v1219_v55 = vpack.c.bf16 %v847_v42, %v847_v42  ;;  %v786_v57 = vadd.f32 %v1541_v53, %v747_v50  ;;  %v745_v59 = vld [vmem:[#allocation2 + $0x20] sm:$0xff]  ;;  %v1584_v61 = vpop.f32.mrb[11].mxu0  ;;  %v1586_v62 = vpop.f32.mrb[11].mxu1 }
 0x10e   : > { %1023 = vst.msk [vmem:[%s1564_s17 + $0x48] sm:$0xf] %vm1004_vm1, %v1234_v41  ;;  %v1235_v56 = vpack.c.bf16 %v863_v43, %v863_v43  ;;  %v802_v58 = vadd.f32 %v1541_v53, %v763_v51  ;;  %v761_v60 = vld [vmem:[#allocation2 + $0xa0] sm:$0xff]  ;;  %1005 = vst.msk [vmem:[%s1564_s17] sm:$0xf] %vm1004_vm1, %v1216_v46  ;;  %v1217_v63 = vpack.c.bf16 %v845_v48, %v845_v48  ;;  %v748_v3 = vld [vmem:[#allocation2 + $0x38] sm:$0xff] }
 0x10f   : > { %1021 = vst.msk [vmem:[%s1564_s17 + $0x40] sm:$0xf] %vm1004_vm1, %v1232_v47  ;;  %v1233_v0 = vpack.c.bf16 %v861_v49, %v861_v49  ;;  %v784_v1 = vadd.f32 %v1541_v53, %v745_v59  ;;  %v800_v2 = vadd.f32 %v1541_v53, %v761_v60  ;;  %v764_v4 = vld [vmem:[#allocation2 + $0xb8] sm:$0xff]  ;;  %1008 = vst.msk [vmem:[%s1564_s17 + $0xc] sm:$0xf] %vm1004_vm1, %v1219_v55  ;;  %v746_v9 = vld [vmem:[#allocation2 + $0x28] sm:$0xff] }
 0x110   : > { %1024 = vst.msk [vmem:[%s1564_s17 + $0x4c] sm:$0xf] %vm1004_vm1, %v1235_v56  ;;  %v818_v5 = vmul.f32 0.01, %v786_v57  ;;  %v834_v6 = vmul.f32 0.01, %v802_v58  ;;  %v787_v7 = vadd.f32 %v1541_v53, %v748_v3  ;;  %v803_v8 = vadd.f32 %v1541_v53, %v764_v4 }
 0x111   : > { %v762_v10 = vld [vmem:[#allocation2 + $0xa8] sm:$0xff]  ;;  %1006 = vst.msk [vmem:[%s1564_s17 + $0x4] sm:$0xf] %vm1004_vm1, %v1217_v63  ;;  %1022 = vst.msk [vmem:[%s1564_s17 + $0x44] sm:$0xf] %vm1004_vm1, %v1233_v0  ;;  %v785_v13 = vadd.f32 %v1541_v53, %v746_v9  ;;  %v315_v34 = vld [vmem:[#allocation2 + $0xd8] sm:$0xff]  ;;  %v683_v56 = vadd.f32 %v1566_v38, %v298_v15  ;;  %v681_v3 = vadd.f32 %v1570_v44, %v296_v21 }
 0x112   : > { %v816_v11 = vmul.f32 0.01, %v784_v1  ;;  %v832_v12 = vmul.f32 0.01, %v800_v2  ;;  %v801_v14 = vadd.f32 %v1541_v53, %v762_v10  ;;  %v850_v17 = vmax.f32 %v786_v57, %v818_v5  ;;  %v1302_v27 = vpop.f32.mrb[12].mxu0  ;;  %v1318_v28 = vpop.f32.mrb[12].mxu1 }
 0x113   : > { %v866_v18 = vmax.f32 %v802_v58, %v834_v6  ;;  %v819_v19 = vmul.f32 0.01, %v787_v7  ;;  %v835_v20 = vmul.f32 0.01, %v803_v8  ;;  %v817_v25 = vmul.f32 0.01, %v785_v13 }
 0x114   : > { %v848_v23 = vmax.f32 %v784_v1, %v816_v11  ;;  %v864_v24 = vmax.f32 %v800_v2, %v832_v12  ;;  %v833_v26 = vmul.f32 0.01, %v801_v14  ;;  %v1222_v29 = vpack.c.bf16 %v850_v17, %v850_v17  ;;  %v297_v35 = vld [vmem:[#allocation2 + $0x48] sm:$0xff]  ;;  %v594_v36 = vpop.f32.mrb[13].mxu0  ;;  %v658_v37 = vpop.f32.mrb[13].mxu1  ;;  %v302_v47 = vld [vmem:[#allocation2 + $0x70] sm:$0xff] }
 0x115   : > { %v1238_v30 = vpack.c.bf16 %v866_v18, %v866_v18  ;;  %v851_v31 = vmax.f32 %v787_v7, %v819_v19  ;;  %v867_v32 = vmax.f32 %v803_v8, %v835_v20  ;;  %v849_v42 = vmax.f32 %v785_v13, %v817_v25  ;;  %v313_v46 = vld [vmem:[#allocation2 + $0xc8] sm:$0xff]  ;;  %v318_v48 = vld [vmem:[#allocation2 + $0xf0] sm:$0xff]  ;;  %v1303_v49 = vpop.f32.mrb[14].mxu0  ;;  %v1319_v50 = vpop.f32.mrb[14].mxu1  ;;  %v300_v58 = vld [vmem:[#allocation2 + $0x60] sm:$0xff]  ;;  %716 = vst.msk [vmem:[#allocation2 + $0x50] sm:$0xff] %vm255_vm0, %v683_v56 }
 0x116   : > { %v1220_v40 = vpack.c.bf16 %v848_v23, %v848_v23  ;;  %v1236_v41 = vpack.c.bf16 %v864_v24, %v864_v24  ;;  %v865_v43 = vmax.f32 %v801_v14, %v833_v26  ;;  %1011 = vst.msk [vmem:[%s1564_s17 + $0x18] sm:$0xf] %vm1004_vm1, %v1222_v29  ;;  %v699_v57 = vadd.f32 %v1568_v39, %v314_v16  ;;  %v316_v59 = vld [vmem:[#allocation2 + $0xe0] sm:$0xff]  ;;  %v303_v60 = vld [vmem:[#allocation2 + $0x78] sm:$0xff]  ;;  %v597_v63 = vpop.f32.mrb[15].mxu0  ;;  %v661_v0 = vpop.f32.mrb[15].mxu1 }
 0x117   : > { %1027 = vst.msk [vmem:[%s1564_s17 + $0x58] sm:$0xf] %vm1004_vm1, %v1238_v30  ;;  %v1223_v51 = vpack.c.bf16 %v851_v31, %v851_v31  ;;  %v1239_v55 = vpack.c.bf16 %v867_v32, %v867_v32  ;;  %v1221_v1 = vpack.c.bf16 %v849_v42, %v849_v42  ;;  %v697_v38 = vadd.f32 %v1572_v45, %v312_v22  ;;  %v319_v4 = vld [vmem:[#allocation2 + $0xf8] sm:$0xff]  ;;  %v301_v39 = vld [vmem:[#allocation2 + $0x68] sm:$0xff] }
 0x118   : > { %1009 = vst.msk [vmem:[%s1564_s17 + $0x10] sm:$0xf] %vm1004_vm1, %v1220_v40  ;;  %1025 = vst.msk [vmem:[%s1564_s17 + $0x50] sm:$0xf] %vm1004_vm1, %v1236_v41  ;;  %v1237_v2 = vpack.c.bf16 %v865_v43, %v865_v43  ;;  %v317_v5 = vld [vmem:[#allocation2 + $0xe8] sm:$0xff]  ;;  %v684_v6 = vadd.f32 %v1574_v52, %v299_v33  ;;  %v700_v7 = vadd.f32 %v1576_v54, %v315_v34 }
 0x119   : > { %1012 = vst.msk [vmem:[%s1564_s17 + $0x1c] sm:$0xf] %vm1004_vm1, %v1223_v51  ;;  %1028 = vst.msk [vmem:[%s1564_s17 + $0x5c] sm:$0xf] %vm1004_vm1, %v1239_v55  ;;  %v682_v8 = vadd.f32 %v1584_v61, %v297_v35  ;;  %v698_v44 = vadd.f32 %v1586_v62, %v313_v46  ;;  %v687_v45 = vadd.f32 %v1302_v27, %v302_v47 }
 0x11a   : > { %732 = vst.msk [vmem:[#allocation2 + $0xd0] sm:$0xff] %vm255_vm0, %v699_v57  ;;  %714 = vst.msk [vmem:[#allocation2 + $0x40] sm:$0xff] %vm255_vm0, %v681_v3  ;;  %v703_v9 = vadd.f32 %v1318_v28, %v318_v48  ;;  %v685_v10 = vadd.f32 %v594_v36, %v300_v58  ;;  %v701_v11 = vadd.f32 %v658_v37, %v316_v59 }
 0x11b   : > { %1010 = vst.msk [vmem:[%s1564_s17 + $0x14] sm:$0xf] %vm1004_vm1, %v1221_v1  ;;  %1026 = vst.msk [vmem:[%s1564_s17 + $0x54] sm:$0xf] %vm1004_vm1, %v1237_v2  ;;  %v688_v52 = vadd.f32 %v1303_v49, %v303_v60  ;;  %v704_v54 = vadd.f32 %v1319_v50, %v319_v4  ;;  %v686_v61 = vadd.f32 %v597_v63, %v301_v39 }
 0x11c   : > { %730 = vst.msk [vmem:[#allocation2 + $0xc0] sm:$0xff] %vm255_vm0, %v697_v38  ;;  %717 = vst.msk [vmem:[#allocation2 + $0x58] sm:$0xff] %vm255_vm0, %v684_v6  ;;  %v702_v62 = vadd.f32 %v661_v0, %v317_v5  ;;  %v751_v12 = vld [vmem:[#allocation2 + $0x50] sm:$0xff] }
 0x11d   : > { %733 = vst.msk [vmem:[#allocation2 + $0xd8] sm:$0xff] %vm255_vm0, %v700_v7  ;;  %715 = vst.msk [vmem:[#allocation2 + $0x48] sm:$0xff] %vm255_vm0, %v682_v8  ;;  %v790_v14 = vadd.f32 %v1541_v53, %v751_v12 }
 0x11e   : > { %731 = vst.msk [vmem:[#allocation2 + $0xc8] sm:$0xff] %vm255_vm0, %v698_v44  ;;  %720 = vst.msk [vmem:[#allocation2 + $0x70] sm:$0xff] %vm255_vm0, %v687_v45 }
 0x11f   : > { %736 = vst.msk [vmem:[#allocation2 + $0xf0] sm:$0xff] %vm255_vm0, %v703_v9  ;;  %718 = vst.msk [vmem:[#allocation2 + $0x60] sm:$0xff] %vm255_vm0, %v685_v10  ;;  %v822_v23 = vmul.f32 0.01, %v790_v14 }
 0x120   : > { %734 = vst.msk [vmem:[#allocation2 + $0xe0] sm:$0xff] %vm255_vm0, %v701_v11  ;;  %721 = vst.msk [vmem:[#allocation2 + $0x78] sm:$0xff] %vm255_vm0, %v688_v52 }
 0x121   : > { %737 = vst.msk [vmem:[#allocation2 + $0xf8] sm:$0xff] %vm255_vm0, %v704_v54  ;;  %719 = vst.msk [vmem:[#allocation2 + $0x68] sm:$0xff] %vm255_vm0, %v686_v61  ;;  %v767_v13 = vld [vmem:[#allocation2 + $0xd0] sm:$0xff]  ;;  %v749_v16 = vld [vmem:[#allocation2 + $0x40] sm:$0xff]  ;;  %v854_v32 = vmax.f32 %v790_v14, %v822_v23 }
 0x122   : > { %735 = vst.msk [vmem:[#allocation2 + $0xe8] sm:$0xff] %vm255_vm0, %v702_v62  ;;  %v806_v15 = vadd.f32 %v1541_v53, %v767_v13  ;;  %v788_v18 = vadd.f32 %v1541_v53, %v749_v16 }
 0x123   : > { %v765_v17 = vld [vmem:[#allocation2 + $0xc0] sm:$0xff]  ;;  %v752_v20 = vld [vmem:[#allocation2 + $0x58] sm:$0xff]  ;;  %v1226_v46 = vpack.c.bf16 %v854_v32, %v854_v32 }
 0x124   : > { %v804_v19 = vadd.f32 %v1541_v53, %v765_v17  ;;  %v768_v21 = vld [vmem:[#allocation2 + $0xd8] sm:$0xff]  ;;  %v750_v22 = vld [vmem:[#allocation2 + $0x48] sm:$0xff]  ;;  %v838_v24 = vmul.f32 0.01, %v806_v15  ;;  %v791_v25 = vadd.f32 %v1541_v53, %v752_v20  ;;  %v820_v28 = vmul.f32 0.01, %v788_v18 }
 0x125   : > { %v807_v26 = vadd.f32 %v1541_v53, %v768_v21  ;;  %v766_v27 = vld [vmem:[#allocation2 + $0xc8] sm:$0xff]  ;;  %v789_v30 = vadd.f32 %v1541_v53, %v750_v22  ;;  %v755_v42 = vld [vmem:[#allocation2 + $0x70] sm:$0xff]  ;;  %1015 = vst.msk [vmem:[%s1564_s17 + $0x28] sm:$0xf] %vm1004_vm1, %v1226_v46 }
 0x126   : > { %v836_v29 = vmul.f32 0.01, %v804_v19  ;;  %v805_v31 = vadd.f32 %v1541_v53, %v766_v27  ;;  %v870_v33 = vmax.f32 %v806_v15, %v838_v24  ;;  %v823_v34 = vmul.f32 0.01, %v791_v25  ;;  %v771_v43 = vld [vmem:[#allocation2 + $0xf0] sm:$0xff]  ;;  %v753_v50 = vld [vmem:[#allocation2 + $0x60] sm:$0xff] }
 0x127   : > { %v839_v35 = vmul.f32 0.01, %v807_v26  ;;  %v852_v36 = vmax.f32 %v788_v18, %v820_v28  ;;  %v821_v40 = vmul.f32 0.01, %v789_v30  ;;  %v769_v51 = vld [vmem:[#allocation2 + $0xe0] sm:$0xff]  ;;  %v756_v59 = vld [vmem:[#allocation2 + $0x78] sm:$0xff]  ;;  %v794_v1 = vadd.f32 %v1541_v53, %v755_v42 }
 0x128   : > { %v868_v37 = vmax.f32 %v804_v19, %v836_v29  ;;  %v837_v41 = vmul.f32 0.01, %v805_v31  ;;  %v1242_v47 = vpack.c.bf16 %v870_v33, %v870_v33  ;;  %v855_v48 = vmax.f32 %v791_v25, %v823_v34  ;;  %v772_v60 = vld [vmem:[#allocation2 + $0xf8] sm:$0xff]  ;;  %v754_v3 = vld [vmem:[#allocation2 + $0x68] sm:$0xff] }
 0x129   : > { %v871_v49 = vmax.f32 %v807_v26, %v839_v35  ;;  %v1224_v55 = vpack.c.bf16 %v852_v36, %v852_v36  ;;  %v853_v57 = vmax.f32 %v789_v30, %v821_v40  ;;  %v810_v2 = vadd.f32 %v1541_v53, %v771_v43  ;;  %v770_v38 = vld [vmem:[#allocation2 + $0xe8] sm:$0xff] }
 0x12a   : > { %v1240_v56 = vpack.c.bf16 %v868_v37, %v868_v37  ;;  %v869_v58 = vmax.f32 %v805_v31, %v837_v41  ;;  %1031 = vst.msk [vmem:[%s1564_s17 + $0x68] sm:$0xf] %vm1004_vm1, %v1242_v47  ;;  %v1227_v63 = vpack.c.bf16 %v855_v48, %v855_v48  ;;  %v792_v5 = vadd.f32 %v1541_v53, %v753_v50 }
 0x12b   : > { %v1243_v0 = vpack.c.bf16 %v871_v49, %v871_v49  ;;  %1013 = vst.msk [vmem:[%s1564_s17 + $0x20] sm:$0xf] %vm1004_vm1, %v1224_v55  ;;  %v1225_v4 = vpack.c.bf16 %v853_v57, %v853_v57  ;;  %v808_v6 = vadd.f32 %v1541_v53, %v769_v51  ;;  %v826_v7 = vmul.f32 0.01, %v794_v1 }
 0x12c   : > { %1029 = vst.msk [vmem:[%s1564_s17 + $0x60] sm:$0xf] %vm1004_vm1, %v1240_v56  ;;  %v1241_v39 = vpack.c.bf16 %v869_v58, %v869_v58  ;;  %1016 = vst.msk [vmem:[%s1564_s17 + $0x2c] sm:$0xf] %vm1004_vm1, %v1227_v63  ;;  %v842_v8 = vmul.f32 0.01, %v810_v2  ;;  %v795_v44 = vadd.f32 %v1541_v53, %v756_v59  ;;  %v811_v45 = vadd.f32 %v1541_v53, %v772_v60 }
 0x12d   : > { %1032 = vst.msk [vmem:[%s1564_s17 + $0x6c] sm:$0xf] %vm1004_vm1, %v1243_v0  ;;  %1014 = vst.msk [vmem:[%s1564_s17 + $0x24] sm:$0xf] %vm1004_vm1, %v1225_v4  ;;  %v824_v9 = vmul.f32 0.01, %v792_v5  ;;  %v793_v11 = vadd.f32 %v1541_v53, %v754_v3  ;;  %v809_v52 = vadd.f32 %v1541_v53, %v770_v38  ;;  %v858_v54 = vmax.f32 %v794_v1, %v826_v7 }
 0x12e   : > { %1030 = vst.msk [vmem:[%s1564_s17 + $0x64] sm:$0xf] %vm1004_vm1, %v1241_v39  ;;  %v840_v10 = vmul.f32 0.01, %v808_v6  ;;  %v874_v61 = vmax.f32 %v810_v2, %v842_v8  ;;  %v827_v62 = vmul.f32 0.01, %v795_v44 }
 0x12f   : > { %v843_v12 = vmul.f32 0.01, %v811_v45  ;;  %v856_v13 = vmax.f32 %v792_v5, %v824_v9  ;;  %v825_v15 = vmul.f32 0.01, %v793_v11  ;;  %v841_v16 = vmul.f32 0.01, %v809_v52 }
 0x130   : > { %v872_v14 = vmax.f32 %v808_v6, %v840_v10  ;;  %v1230_v17 = vpack.c.bf16 %v858_v54, %v858_v54  ;;  %v1246_v18 = vpack.c.bf16 %v874_v61, %v874_v61  ;;  %v859_v19 = vmax.f32 %v795_v44, %v827_v62 }
 0x131   : > { %v875_v20 = vmax.f32 %v811_v45, %v843_v12  ;;  %v1228_v53 = vpack.c.bf16 %v856_v13, %v856_v13  ;;  %v857_v22 = vmax.f32 %v793_v11, %v825_v15  ;;  %v873_v23 = vmax.f32 %v809_v52, %v841_v16 }
 0x132   : > { %v1244_v21 = vpack.c.bf16 %v872_v14, %v872_v14  ;;  %1019 = vst.msk [vmem:[%s1564_s17 + $0x38] sm:$0xf] %vm1004_vm1, %v1230_v17  ;;  %1035 = vst.msk [vmem:[%s1564_s17 + $0x78] sm:$0xf] %vm1004_vm1, %v1246_v18  ;;  %v1231_v24 = vpack.c.bf16 %v859_v19, %v859_v19 }
 0x133   : > { %v1247_v25 = vpack.c.bf16 %v875_v20, %v875_v20  ;;  %1017 = vst.msk [vmem:[%s1564_s17 + $0x30] sm:$0xf] %vm1004_vm1, %v1228_v53  ;;  %v1229_v26 = vpack.c.bf16 %v857_v22, %v857_v22  ;;  %v1245_v27 = vpack.c.bf16 %v873_v23, %v873_v23 }
 0x134   : > { %1033 = vst.msk [vmem:[%s1564_s17 + $0x70] sm:$0xf] %vm1004_vm1, %v1244_v21  ;;  %1020 = vst.msk [vmem:[%s1564_s17 + $0x3c] sm:$0xf] %vm1004_vm1, %v1231_v24 }
 0x135   : > { %1036 = vst.msk [vmem:[%s1564_s17 + $0x7c] sm:$0xf] %vm1004_vm1, %v1247_v25  ;;  %1018 = vst.msk [vmem:[%s1564_s17 + $0x34] sm:$0xf] %vm1004_vm1, %v1229_v26 }
 0x136   : > { %1034 = vst.msk [vmem:[%s1564_s17 + $0x74] sm:$0xf] %vm1004_vm1, %v1245_v27 }
 0x137 PF: > { %s13_s14 = sadd.s32 1, %s1407_s14   ;;  %s1707_s12 = smov %s1403_s13 }
 0x138   : > { %p10_p5 = scmp.ge.s32.totalorder %s13_s14, 4   ;;  %s1708_s13 = smov %s1710_s15 }
 0x13a   :  { %12 = sbr.rel (!%p10_p5) target bundleno = 2 (0x2), region = 73 }

// kernel: _lambda_.6
= control target key start
LH: loop header
LB: loop body
LE: loop exit
PB: predicated region body
PF: predicated region fallthrough
CT: control target
= control target key end

     0   :  { %s845_s9 = smov 0   ;;  %s847_s10 = smov 0   ;;  %s991_s0 = inlined_call_operand.vmem [shape: bf16[2,64,128], index: 0, kind: input, shape index: {}]   ;;  %s992_s1 = inlined_call_operand.vmem [shape: bf16[128,16], index: 1, kind: input, shape index: {}]   ;;  %s993_s2 = inlined_call_operand.vmem [shape: bf16[2,64,16], index: 2, kind: output, shape index: {}]  }
   0x1   :  { %s849_s11 = smov 0  }
   0x2 LB: > { %s31_s12 = sadd.s32 1, %s823_s10  ;;  %p677_p0 = scmp.ge.s32.totalorder %s827_s11, 1  ;;  %s827_s11 = sphi %s849_s11, %s12_s11   ;;  %s823_s10 = sphi %s847_s10, %s995_s10   ;;  %s819_s9 = sphi %s845_s9, %s994_s9  }
   0x3   : > { %p33_p1 = scmp.ge.s32.totalorder %s31_s12, 2  ;;  %p156_p2 = scmp.lt.s32.totalorder %s827_s11, 3 }
   0x5   : > { %s997_s12 = smov (%p33_p1, %s31_s12), 0  ;;  %p157_p3 = pnand %p677_p0, %p156_p2 }
   0x6   : > { %v791_v0 = vld [vmem:[%s992_s1] sm:$0xff] (!%p157_p3)   ;;  %p195_p4 = scmp.lt.s32.totalorder (!%p157_p3), %s819_s9, 1  ;;  %v792_v1 = vld [vmem:[%s992_s1 + $0x8] sm:$0xff] (!%p157_p3)   ;;  %vm228_vm0 = vcmask (!%p157_p3), 130048   ;;  %v793_v2 = vld [vmem:[%s992_s1 + $0x10] sm:$0xff] (!%p157_p3)   ;;  %v829_v3 = vmov (!%p157_p3), 0.0  }
   0x7   : > { %160 = sbr.rel (%p157_p3) target bundleno = 324 (0x144), region = 28  ;;  %726 = vmatprep.subr.bf16.mxu0 (!%p157_p3), %v791_v0  ;;  %750 = vmatprep.subr.bf16.mxu1 (!%p157_p3), %v791_v0  ;;  %231 = vst.msk [vmem:[#allocation2 + $0x10] sm:$0xff] (!%p157_p3), %vm228_vm0, %v829_v3  ;;  %229 = vst.msk [vmem:[#allocation2] sm:$0xff] (!%p157_p3), %vm228_vm0, %v829_v3  ;;  %v794_v4 = vld [vmem:[%s992_s1 + $0x18] sm:$0xff] (!%p157_p3)   ;;  %v795_v7 = vld [vmem:[%s992_s1 + $0x20] sm:$0xff] (!%p157_p3)   ;;  %vm555_vm1 = vcmask (!%p157_p3), 125952  }
   0x8   : > { %727 = vmatpush3.bf16.msra.mxu0 (!%p157_p3), %v791_v0  ;;  %758 = vmatpush3.bf16.msra.mxu1 (!%p157_p3), %v791_v0  ;;  %230 = vst.msk [vmem:[#allocation2 + $0x8] sm:$0xff] (!%p157_p3), %vm228_vm0, %v829_v3  ;;  %232 = vst.msk [vmem:[#allocation2 + $0x18] sm:$0xff] (!%p157_p3), %vm228_vm0, %v829_v3  ;;  %v796_v8 = vld [vmem:[%s992_s1 + $0x28] sm:$0xff] (!%p157_p3)   ;;  %v797_v9 = vld [vmem:[%s992_s1 + $0x30] sm:$0xff] (!%p157_p3)  }
   0x9   : > { %728 = vmatprep.subr.bf16.mxu0 (!%p157_p3), %v792_v1  ;;  %751 = vmatprep.subr.bf16.mxu1 (!%p157_p3), %v792_v1  ;;  %233 = vst.msk [vmem:[#allocation2 + $0x20] sm:$0xff] (!%p157_p3), %vm228_vm0, %v829_v3  ;;  %234 = vst.msk [vmem:[#allocation2 + $0x28] sm:$0xff] (!%p157_p3), %vm228_vm0, %v829_v3  ;;  %v798_v10 = vld [vmem:[%s992_s1 + $0x38] sm:$0xff] (!%p157_p3)  }
   0xa   : > { %235 = vst.msk [vmem:[#allocation2 + $0x30] sm:$0xff] (!%p157_p3), %vm228_vm0, %v829_v3  ;;  %236 = vst.msk [vmem:[#allocation2 + $0x38] sm:$0xff] (!%p157_p3), %vm228_vm0, %v829_v3 }
   0xc   : > { %729 = vmatpush3.bf16.msra.mxu0 (!%p157_p3), %v792_v1  ;;  %759 = vmatpush3.bf16.msra.mxu1 (!%p157_p3), %v792_v1 }
   0xd   : > { %730 = vmatprep.subr.bf16.mxu0 (!%p157_p3), %v793_v2  ;;  %752 = vmatprep.subr.bf16.mxu1 (!%p157_p3), %v793_v2 }
   0xe   : > { %s999_s9 = smov (!%p195_p4, %s819_s9), 1  ;;  %v239_v13 = vld [vmem:[#allocation2 + $0x10] sm:$0xff]  ;;  %v237_v15 = vld [vmem:[#allocation2] sm:$0xff] }
   0xf   : > { %s704_s19 = sshll.u32 %s999_s9, 5  ;;  %v240_v18 = vld [vmem:[#allocation2 + $0x18] sm:$0xff]  ;;  %v238_v23 = vld [vmem:[#allocation2 + $0x8] sm:$0xff] }
  0x10   : > { %s888_s22 = scalar_lea.vmem %s991_s0, %s704_s19  ;;  %731 = vmatpush3.bf16.msra.mxu0 %v793_v2  ;;  %760 = vmatpush3.bf16.msra.mxu1 %v793_v2  ;;  %v241_v16 = vld [vmem:[#allocation2 + $0x20] sm:$0xff]  ;;  %v242_v26 = vld [vmem:[#allocation2 + $0x28] sm:$0xff]  ;;  %s221_s7 = scalar_lea.vmem %s993_s2, %s704_s19 }
  0x11   : > { %v799_v5 = vld [vmem:[%s888_s22] sm:$0xff]   ;;  %v801_v6 = vld [vmem:[%s888_s22 + $0x10] sm:$0xff]   ;;  %732 = vmatprep.subr.bf16.mxu0 %v794_v4  ;;  %753 = vmatprep.subr.bf16.mxu1 %v794_v4  ;;  %v800_v11 = vld [vmem:[%s888_s22 + $0x8] sm:$0xff]  }
  0x12   : > { %742 = vmatprep.mubr.bf16.mxu0 %v799_v5  ;;  %746 = vmatprep.mubr.bf16.mxu1 %v801_v6  ;;  %v802_v12 = vld [vmem:[%s888_s22 + $0x18] sm:$0xff]   ;;  %v243_v14 = vld [vmem:[#allocation2 + $0x30] sm:$0xff] }
  0x13   : > { %v244_v20 = vld [vmem:[#allocation2 + $0x38] sm:$0xff] }
  0x14   : > { %733 = vmatpush3.bf16.msra.mxu0 %v794_v4  ;;  %761 = vmatpush3.bf16.msra.mxu1 %v794_v4 }
  0x15   : > { %734 = vmatprep.subr.bf16.mxu0 %v795_v7  ;;  %754 = vmatprep.subr.bf16.mxu1 %v795_v7 }
  0x18   : > { %735 = vmatpush3.bf16.msra.mxu0 %v795_v7  ;;  %762 = vmatpush3.bf16.msra.mxu1 %v795_v7 }
  0x19   : > { %736 = vmatprep.subr.bf16.mxu0 %v796_v8  ;;  %755 = vmatprep.subr.bf16.mxu1 %v796_v8 }
  0x1c   : > { %737 = vmatpush3.bf16.msra.mxu0 %v796_v8  ;;  %763 = vmatpush3.bf16.msra.mxu1 %v796_v8 }
  0x1d   : > { %738 = vmatprep.subr.bf16.mxu0 %v797_v9  ;;  %756 = vmatprep.subr.bf16.mxu1 %v797_v9 }
  0x20   : > { %739 = vmatpush3.bf16.msra.mxu0 %v797_v9  ;;  %764 = vmatpush3.bf16.msra.mxu1 %v797_v9 }
  0x21   : > { %740 = vmatprep.subr.bf16.mxu0 %v798_v10  ;;  %757 = vmatprep.subr.bf16.mxu1 %v798_v10 }
  0x24   : > { %741 = vmatpush3.bf16.msra.mxu0 %v798_v10  ;;  %765 = vmatpush3.bf16.msra.mxu1 %v798_v10 }
  0x27   : > { %743 = vmatmul.mubr.bf16.vlgmr.msra.gmra.mrb[0].mxu0 %v800_v11  ;;  %747 = vmatmul.mubr.bf16.vlgmr.msra.gmra.mrb[0].mxu1 %v802_v12 }
  0xfa   : > { %v744_v17 = vpop.f32.mrb[0].mxu0  ;;  %v748_v19 = vpop.f32.mrb[0].mxu1 }
  0xfb   : > { %v408_v21 = vadd.f32 %v744_v17, %v239_v13  ;;  %v375_v22 = vpop.f32.mrb[1].mxu0  ;;  %v412_v24 = vadd.f32 %v748_v19, %v243_v14  ;;  %v391_v25 = vpop.f32.mrb[1].mxu1 }
  0xfc   : > { %v406_v27 = vadd.f32 %v375_v22, %v237_v15  ;;  %v745_v28 = vpop.f32.mrb[2].mxu0  ;;  %v410_v29 = vadd.f32 %v391_v25, %v241_v16  ;;  %v749_v30 = vpop.f32.mrb[2].mxu1 }
  0xfd   : > { %417 = vst.msk [vmem:[#allocation2 + $0x10] sm:$0xff] %vm228_vm0, %v408_v21  ;;  %v409_v31 = vadd.f32 %v745_v28, %v240_v18  ;;  %v378_v32 = vpop.f32.mrb[3].mxu0  ;;  %421 = vst.msk [vmem:[#allocation2 + $0x30] sm:$0xff] %vm228_vm0, %v412_v24  ;;  %v413_v33 = vadd.f32 %v749_v30, %v244_v20  ;;  %v394_v34 = vpop.f32.mrb[3].mxu1 }
  0xfe   : > { %415 = vst.msk [vmem:[#allocation2] sm:$0xff] %vm228_vm0, %v406_v27  ;;  %v407_v35 = vadd.f32 %v378_v32, %v238_v23  ;;  %419 = vst.msk [vmem:[#allocation2 + $0x20] sm:$0xff] %vm228_vm0, %v410_v29  ;;  %v411_v36 = vadd.f32 %v394_v34, %v242_v26 }
  0xff   : > { %418 = vst.msk [vmem:[#allocation2 + $0x18] sm:$0xff] %vm228_vm0, %v409_v31  ;;  %422 = vst.msk [vmem:[#allocation2 + $0x38] sm:$0xff] %vm228_vm0, %v413_v33 }
 0x100   : > { %416 = vst.msk [vmem:[#allocation2 + $0x8] sm:$0xff] %vm228_vm0, %v407_v35  ;;  %420 = vst.msk [vmem:[#allocation2 + $0x28] sm:$0xff] %vm228_vm0, %v411_v36 }
 0x104   : > { %v917_v37 = vld [vmem:[#allocation2 + $0x10] sm:$0xff] }
 0x105   : > { %v919_v38 = vld [vmem:[#allocation2] sm:$0xff]  ;;  %v458_v43 = vmul.f32 %v917_v37, %v917_v37  ;;  %v437_v47 = vsel %vm228_vm0, %v917_v37, 0.0  ;;  %v432_v60 = vld [vmem:[#allocation2 + $0x30] sm:$0xff] }
 0x106   : > { %v456_v39 = vmul.f32 %v919_v38, %v919_v38  ;;  %v923_v40 = vld [vmem:[#allocation2 + $0x18] sm:$0xff]  ;;  %v927_v42 = vld [vmem:[#allocation2 + $0x20] sm:$0xff]  ;;  %v434_v44 = vsel %vm228_vm0, %v919_v38, 0.0  ;;  %v462_v4 = vmul.f32 %v432_v60, %v432_v60  ;;  %v445_v8 = vsel %vm228_vm0, %v432_v60, 0.0 }
 0x107   : > { %v925_v41 = vld [vmem:[#allocation2 + $0x8] sm:$0xff]  ;;  %v459_v50 = vmul.f32 %v923_v40, %v923_v40  ;;  %v460_v52 = vmul.f32 %v927_v42, %v927_v42  ;;  %v467_v56 = vsel %vm228_vm0, %v458_v43, 0.0  ;;  %v439_v57 = vsel %vm228_vm0, %v923_v40, 0.0  ;;  %v433_v3 = vld [vmem:[#allocation2 + $0x38] sm:$0xff] }
 0x108   : > { %v435_v45 = vsel %vm228_vm0, %v925_v41, 0.0  ;;  %v457_v46 = vmul.f32 %v925_v41, %v925_v41  ;;  %v464_v49 = vsel %vm228_vm0, %v456_v39, 0.0  ;;  %v945_v55 = vld [vmem:[#allocation2 + $0x28] sm:$0xff]  ;;  %v441_v58 = vsel %vm228_vm0, %v927_v42, 0.0 }
 0x109   : > { %v436_v48 = vadd.f32 %v435_v45, %v434_v44  ;;  %v469_v62 = vsel %vm228_vm0, %v459_v50, 0.0  ;;  %v471_v63 = vsel %vm228_vm0, %v460_v52, 0.0  ;;  %v461_v0 = vmul.f32 %v945_v55, %v945_v55 }
 0x10a   : > { %v465_v51 = vsel %vm228_vm0, %v457_v46, 0.0  ;;  %v443_v5 = vsel %vm228_vm0, %v945_v55, 0.0  ;;  %v463_v9 = vmul.f32 %v433_v3, %v433_v3  ;;  %v475_v13 = vsel %vm228_vm0, %v462_v4, 0.0 }
 0x10b   : > { %v438_v53 = vadd.f32 %v437_v47, %v436_v48  ;;  %v466_v54 = vadd.f32 %v465_v51, %v464_v49  ;;  %v473_v10 = vsel %vm228_vm0, %v461_v0, 0.0  ;;  %v447_v14 = vsel %vm228_vm0, %v433_v3, 0.0 }
 0x10c   : > { %v477_v17 = vsel %vm228_vm0, %v463_v9, 0.0 }
 0x10d   : > { %v468_v59 = vadd.f32 %v467_v56, %v466_v54  ;;  %v440_v61 = vadd.f32 %v439_v57, %v438_v53 }
 0x10f   : > { %v442_v1 = vadd.f32 %v441_v58, %v440_v61  ;;  %v470_v2 = vadd.f32 %v469_v62, %v468_v59 }
 0x111   : > { %v472_v6 = vadd.f32 %v471_v63, %v470_v2  ;;  %v444_v7 = vadd.f32 %v443_v5, %v442_v1 }
 0x113   : > { %v446_v11 = vadd.f32 %v445_v8, %v444_v7  ;;  %v474_v12 = vadd.f32 %v473_v10, %v472_v6 }
 0x115   : > { %v448_v15 = vadd.f32 %v447_v14, %v446_v11  ;;  %v476_v16 = vadd.f32 %v475_v13, %v474_v12 }
 0x117   : > { %v449_v18 = vrot.slane %v448_v15, 4  ;;  %v478_v19 = vadd.f32 %v477_v17, %v476_v16 }
 0x119   : > { %v450_v20 = vadd.f32 %v449_v18, %v448_v15  ;;  %v479_v21 = vrot.slane %v478_v19, 4 }
 0x11b   : > { %v451_v22 = vrot.slane %v450_v20, 2  ;;  %v480_v23 = vadd.f32 %v479_v21, %v478_v19 }
 0x11d   : > { %v452_v24 = vadd.f32 %v451_v22, %v450_v20  ;;  %v481_v25 = vrot.slane %v480_v23, 2 }
 0x11f   : > { %v453_v26 = vrot.slane %v452_v24, 1  ;;  %v482_v27 = vadd.f32 %v481_v25, %v480_v23 }
 0x121   : > { %v454_v28 = vadd.f32 %v453_v26, %v452_v24  ;;  %v483_v29 = vrot.slane %v482_v27, 1 }
 0x123   : > { %v455_v30 = vmul.f32 0.015625, %v454_v28  ;;  %v484_v31 = vadd.f32 %v483_v29, %v482_v27 }
 0x125   : > { %v485_v32 = vmul.f32 0.015625, %v484_v31  ;;  %v486_v33 = vmul.f32 %v455_v30, %v455_v30  ;;  %v489_v39 = vsub.f32 %v919_v38, %v455_v30  ;;  %v490_v43 = vsub.f32 %v925_v41, %v455_v30 }
 0x126   : > { %v491_v44 = vsub.f32 %v917_v37, %v455_v30  ;;  %v492_v45 = vsub.f32 %v923_v40, %v455_v30  ;;  %v493_v47 = vsub.f32 %v927_v42, %v455_v30  ;;  %v494_v48 = vsub.f32 %v945_v55, %v455_v30 }
 0x127   : > { %v487_v34 = vsub.f32 %v485_v32, %v486_v33  ;;  %v495_v49 = vsub.f32 %v432_v60, %v455_v30  ;;  %v496_v50 = vsub.f32 %v433_v3, %v455_v30 }
 0x129   : > { %v488_v35 = vmax.f32 %v487_v34, 0.0 }
 0x12b   : > { %v497_v36 = vadd.f32 1e-05, %v488_v35 }
 0x12d   : > { %803 = vrsqrt.f32 %v497_v36 }
 0x137   : > { %v804_v46 = vpop.eup %803 }
 0x138   : > { %v499_v51 = vmul.f32 %v804_v46, %v489_v39  ;;  %v500_v52 = vmul.f32 %v804_v46, %v490_v43  ;;  %v501_v53 = vmul.f32 %v804_v46, %v491_v44  ;;  %v502_v54 = vmul.f32 %v804_v46, %v492_v45 }
 0x139   : > { %v503_v56 = vmul.f32 %v804_v46, %v493_v47  ;;  %v504_v38 = vmul.f32 %v804_v46, %v494_v48  ;;  %v505_v57 = vmul.f32 %v804_v46, %v495_v49  ;;  %v506_v41 = vmul.f32 %v804_v46, %v496_v50 }
 0x13a   : > { %v507_v58 = vmul.f32 0.01, %v499_v51  ;;  %v508_v37 = vmul.f32 0.01, %v500_v52  ;;  %v509_v59 = vmul.f32 0.01, %v501_v53 }
 0x13b   : > { %v510_v40 = vmul.f32 0.01, %v502_v54  ;;  %v511_v61 = vmul.f32 0.01, %v503_v56  ;;  %v512_v62 = vmul.f32 0.01, %v504_v38 }
 0x13c   : > { %v513_v42 = vmul.f32 0.01, %v505_v57  ;;  %v514_v63 = vmul.f32 0.01, %v506_v41  ;;  %v515_v55 = vmax.f32 %v499_v51, %v507_v58  ;;  %v516_v60 = vmax.f32 %v500_v52, %v508_v37 }
 0x13d   : > { %v517_v0 = vmax.f32 %v501_v53, %v509_v59  ;;  %v518_v1 = vmax.f32 %v502_v54, %v510_v40  ;;  %v519_v2 = vmax.f32 %v503_v56, %v511_v61  ;;  %v520_v3 = vmax.f32 %v504_v38, %v512_v62 }
 0x13e   : > { %v521_v4 = vmax.f32 %v505_v57, %v513_v42  ;;  %v522_v5 = vmax.f32 %v506_v41, %v514_v63  ;;  %v706_v6 = vpack.c.bf16 %v515_v55, %v515_v55  ;;  %v707_v7 = vpack.c.bf16 %v516_v60, %v516_v60 }
 0x13f   : > { %v708_v8 = vpack.c.bf16 %v517_v0, %v517_v0  ;;  %v709_v9 = vpack.c.bf16 %v518_v1, %v518_v1  ;;  %v710_v10 = vpack.c.bf16 %v519_v2, %v519_v2  ;;  %v711_v11 = vpack.c.bf16 %v520_v3, %v520_v3 }
 0x140   : > { %v712_v12 = vpack.c.bf16 %v521_v4, %v521_v4  ;;  %v713_v13 = vpack.c.bf16 %v522_v5, %v522_v5  ;;  %556 = vst.msk [vmem:[%s221_s7] sm:$0xf] %vm555_vm1, %v706_v6  ;;  %557 = vst.msk [vmem:[%s221_s7 + $0x4] sm:$0xf] %vm555_vm1, %v707_v7 }
 0x141   : > { %558 = vst.msk [vmem:[%s221_s7 + $0x8] sm:$0xf] %vm555_vm1, %v708_v8  ;;  %559 = vst.msk [vmem:[%s221_s7 + $0xc] sm:$0xf] %vm555_vm1, %v709_v9 }
 0x142   : > { %560 = vst.msk [vmem:[%s221_s7 + $0x10] sm:$0xf] %vm555_vm1, %v710_v10  ;;  %561 = vst.msk [vmem:[%s221_s7 + $0x14] sm:$0xf] %vm555_vm1, %v711_v11 }
 0x143   : > { %562 = vst.msk [vmem:[%s221_s7 + $0x18] sm:$0xf] %vm555_vm1, %v712_v12  ;;  %563 = vst.msk [vmem:[%s221_s7 + $0x1c] sm:$0xf] %vm555_vm1, %v713_v13 }
 0x144 PF: > { %s12_s11 = sadd.s32 1, %s827_s11   ;;  %s994_s9 = smov %s823_s10 }
 0x145   : > { %p9_p5 = scmp.ge.s32.totalorder %s12_s11, 4   ;;  %s995_s10 = smov %s997_s12 }
 0x147   :  { %11 = sbr.rel (!%p9_p5) target bundleno = 2 (0x2), region = 69 }

// kernel: _lambda_.7
= control target key start
LH: loop header
LB: loop body
LE: loop exit
PB: predicated region body
PF: predicated region fallthrough
CT: control target
= control target key end

     0   :  { %s733_s9 = smov 0   ;;  %s735_s10 = smov 0   ;;  %s826_s0 = inlined_call_operand.vmem [shape: bf16[2,16,256], index: 0, kind: input, shape index: {}]   ;;  %s827_s1 = inlined_call_operand.vmem [shape: bf16[256,32], index: 1, kind: input, shape index: {}]   ;;  %s828_s2 = inlined_call_operand.vmem [shape: bf16[2,16,32], index: 2, kind: output, shape index: {}]  }
   0x1   :  { %s737_s11 = smov 0  }
   0x2 LB: > { %s31_s12 = sadd.s32 1, %s711_s10  ;;  %p594_p0 = scmp.ge.s32.totalorder %s715_s11, 1  ;;  %s715_s11 = sphi %s737_s11, %s12_s11   ;;  %s711_s10 = sphi %s735_s10, %s830_s10   ;;  %s707_s9 = sphi %s733_s9, %s829_s9  }
   0x3   : > { %p33_p1 = scmp.ge.s32.totalorder %s31_s12, 2  ;;  %p159_p2 = scmp.lt.s32.totalorder %s715_s11, 3 }
   0x5   : > { %s832_s12 = smov (%p33_p1, %s31_s12), 0  ;;  %p160_p3 = pnand %p594_p0, %p159_p2 }
   0x6   : > { %v672_v0 = vld [vmem:[%s827_s1 + $0x40] sm:$0xff] (!%p160_p3)   ;;  %v674_v2 = vld [vmem:[%s827_s1 + $0x48] sm:$0xff] (!%p160_p3)   ;;  %p201_p4 = scmp.lt.s32.totalorder (!%p160_p3), %s707_s9, 1  ;;  %v676_v4 = vld [vmem:[%s827_s1 + $0x50] sm:$0xff] (!%p160_p3)   ;;  %vm236_vm0 = vcmask (!%p160_p3), 261120   ;;  %v717_v18 = vmov (!%p160_p3), 0.0  }
   0x7   : > { %163 = sbr.rel (%p160_p3) target bundleno = 311 (0x137), region = 28  ;;  %v673_v1 = vld [vmem:[%s827_s1] sm:$0xff] (!%p160_p3)   ;;  %625 = vmatprep.subr.bf16.mxu0 (!%p160_p3), %v672_v0  ;;  %v675_v3 = vld [vmem:[%s827_s1 + $0x8] sm:$0xff] (!%p160_p3)   ;;  %v677_v5 = vld [vmem:[%s827_s1 + $0x10] sm:$0xff] (!%p160_p3)   ;;  %237 = vst.msk [vmem:[#allocation2] sm:$0xff] (!%p160_p3), %vm236_vm0, %v717_v18  ;;  %vm475_vm1 = vcmask (!%p160_p3), 257024  }
   0x8   : > { %626 = vmatpush3.bf16.msra.mxu0 (!%p160_p3), %v673_v1  ;;  %v678_v6 = vld [vmem:[%s827_s1 + $0x58] sm:$0xff] (!%p160_p3)   ;;  %v680_v8 = vld [vmem:[%s827_s1 + $0x60] sm:$0xff] (!%p160_p3)   ;;  %v682_v10 = vld [vmem:[%s827_s1 + $0x68] sm:$0xff] (!%p160_p3)   ;;  %238 = vst.msk [vmem:[#allocation2 + $0x8] sm:$0xff] (!%p160_p3), %vm236_vm0, %v717_v18 }
   0x9   : > { %627 = vmatprep.subr.bf16.mxu0 (!%p160_p3), %v674_v2  ;;  %v679_v7 = vld [vmem:[%s827_s1 + $0x18] sm:$0xff] (!%p160_p3)   ;;  %v681_v9 = vld [vmem:[%s827_s1 + $0x20] sm:$0xff] (!%p160_p3)   ;;  %v683_v12 = vld [vmem:[%s827_s1 + $0x28] sm:$0xff] (!%p160_p3)  }
   0xa   : > { %v684_v13 = vld [vmem:[%s827_s1 + $0x70] sm:$0xff] (!%p160_p3)   ;;  %v686_v15 = vld [vmem:[%s827_s1 + $0x78] sm:$0xff] (!%p160_p3)  }
   0xb   : > { %v685_v14 = vld [vmem:[%s827_s1 + $0x30] sm:$0xff] (!%p160_p3)   ;;  %v687_v16 = vld [vmem:[%s827_s1 + $0x38] sm:$0xff] (!%p160_p3)  }
   0xc   : > { %628 = vmatpush3.bf16.msra.mxu0 (!%p160_p3), %v675_v3 }
   0xd   : > { %629 = vmatprep.subr.bf16.mxu0 (!%p160_p3), %v676_v4 }
   0xe   : > { %s834_s9 = smov (!%p201_p4, %s707_s9), 1  ;;  %v239_v20 = vld [vmem:[#allocation2] sm:$0xff] }
   0xf   : > { %s621_s29 = sshll.u32 %s834_s9, 4  ;;  %v240_v24 = vld [vmem:[#allocation2 + $0x8] sm:$0xff]  ;;  %s622_s25 = sshll.u32 %s834_s9, 3 }
  0x10   : > { %630 = vmatpush3.bf16.msra.mxu0 %v677_v5  ;;  %s212_s6 = scalar_lea.vmem %s826_s0, %s621_s29  ;;  %s229_s28 = scalar_lea.vmem %s828_s2, %s622_s25 }
  0x11   : > { %631 = vmatprep.subr.bf16.mxu0 %v678_v6  ;;  %v690_v11 = vld [vmem:[%s212_s6 + $0x4] ss:$8 sps:$4 sm:$0xff]   ;;  %v688_v17 = vld [vmem:[%s212_s6] ss:$8 sps:$4 sm:$0xff]  }
  0x12   : > { %413 = vmatprep.mubr.bf16.mxu0 %v690_v11 }
  0x14   : > { %632 = vmatpush3.bf16.msra.mxu0 %v679_v7 }
  0x15   : > { %633 = vmatprep.subr.bf16.mxu0 %v680_v8 }
  0x18   : > { %634 = vmatpush3.bf16.msra.mxu0 %v681_v9 }
  0x19   : > { %635 = vmatprep.subr.bf16.mxu0 %v682_v10 }
  0x1c   : > { %636 = vmatpush3.bf16.msra.mxu0 %v683_v12 }
  0x1d   : > { %637 = vmatprep.subr.bf16.mxu0 %v684_v13 }
  0x20   : > { %638 = vmatpush3.bf16.msra.mxu0 %v685_v14 }
  0x21   : > { %639 = vmatprep.subr.bf16.mxu0 %v686_v15 }
  0x24   : > { %640 = vmatpush3.bf16.msra.mxu0 %v687_v16 }
  0x27   : > { %414 = vmatmul.mubr.bf16.vlgmr.msra.gmra.mrb[0].mxu0 %v688_v17 }
  0xfa   : > { %v641_v19 = vpop.f32.mrb[0].mxu0 }
  0xfb   : > { %v642_v21 = vpop.f32.mrb[1].mxu0 }
  0xfc   : > { %v643_v22 = vadd.f32 %v642_v21, %v641_v19  ;;  %v644_v23 = vpop.f32.mrb[2].mxu0 }
  0xfd   : > { %v645_v25 = vpop.f32.mrb[3].mxu0 }
  0xfe   : > { %v422_v26 = vadd.f32 %v643_v22, %v239_v20  ;;  %v646_v27 = vadd.f32 %v645_v25, %v644_v23 }
 0x100   : > { %425 = vst.msk [vmem:[#allocation2] sm:$0xff] %vm236_vm0, %v422_v26  ;;  %v423_v28 = vadd.f32 %v646_v27, %v240_v24 }
 0x102   : > { %426 = vst.msk [vmem:[#allocation2 + $0x8] sm:$0xff] %vm236_vm0, %v423_v28 }
 0x107   : > { %v430_v29 = vld [vmem:[#allocation2] sm:$0xff] }
 0x108   : > { %v442_v30 = vmul.f32 %v430_v29, %v430_v29  ;;  %v432_v32 = vsel %vm236_vm0, %v430_v29, 0.0 }
 0x109   : > { %v431_v31 = vld [vmem:[#allocation2 + $0x8] sm:$0xff] }
 0x10a   : > { %v433_v33 = vsel %vm236_vm0, %v431_v31, 0.0  ;;  %v443_v34 = vmul.f32 %v431_v31, %v431_v31  ;;  %v444_v36 = vsel %vm236_vm0, %v442_v30, 0.0 }
 0x10b   : > { %v434_v35 = vadd.f32 %v433_v33, %v432_v32 }
 0x10c   : > { %v445_v37 = vsel %vm236_vm0, %v443_v34, 0.0 }
 0x10d   : > { %v435_v38 = vrot.slane %v434_v35, 4  ;;  %v446_v39 = vadd.f32 %v445_v37, %v444_v36 }
 0x10f   : > { %v436_v40 = vadd.f32 %v435_v38, %v434_v35  ;;  %v447_v41 = vrot.slane %v446_v39, 4 }
 0x111   : > { %v437_v42 = vrot.slane %v436_v40, 2  ;;  %v448_v43 = vadd.f32 %v447_v41, %v446_v39 }
 0x113   : > { %v438_v44 = vadd.f32 %v437_v42, %v436_v40  ;;  %v449_v45 = vrot.slane %v448_v43, 2 }
 0x115   : > { %v439_v46 = vrot.slane %v438_v44, 1  ;;  %v450_v47 = vadd.f32 %v449_v45, %v448_v43 }
 0x117   : > { %v440_v48 = vadd.f32 %v439_v46, %v438_v44  ;;  %v451_v49 = vrot.slane %v450_v47, 1 }
 0x119   : > { %v441_v50 = vmul.f32 0.0625, %v440_v48  ;;  %v452_v51 = vadd.f32 %v451_v49, %v450_v47 }
 0x11b   : > { %v453_v52 = vmul.f32 0.0625, %v452_v51  ;;  %v454_v53 = vmul.f32 %v441_v50, %v441_v50  ;;  %v457_v57 = vsub.f32 %v430_v29, %v441_v50  ;;  %v458_v58 = vsub.f32 %v431_v31, %v441_v50 }
 0x11d   : > { %v455_v54 = vsub.f32 %v453_v52, %v454_v53 }
 0x11f   : > { %v456_v55 = vmax.f32 %v455_v54, 0.0 }
 0x121   : > { %v459_v56 = vadd.f32 1e-05, %v456_v55 }
 0x123   : > { %691 = vrsqrt.f32 %v459_v56 }
 0x12d   : > { %v692_v59 = vpop.eup %691 }
 0x12e   : > { %v461_v60 = vmul.f32 %v692_v59, %v457_v57  ;;  %v462_v61 = vmul.f32 %v692_v59, %v458_v58 }
 0x130   : > { %v463_v62 = vmul.f32 0.01, %v461_v60  ;;  %v464_v63 = vmul.f32 0.01, %v462_v61 }
 0x132   : > { %v465_v0 = vmax.f32 %v461_v60, %v463_v62  ;;  %v466_v1 = vmax.f32 %v462_v61, %v464_v63 }
 0x134   : > { %v623_v2 = vpack.c.bf16 %v465_v0, %v465_v0  ;;  %v624_v3 = vpack.c.bf16 %v466_v1, %v466_v1 }
 0x136   : > { %476 = vst.msk [vmem:[%s229_s28] sm:$0xf] %vm475_vm1, %v623_v2  ;;  %477 = vst.msk [vmem:[%s229_s28 + $0x4] sm:$0xf] %vm475_vm1, %v624_v3 }
 0x137 PF: > { %s12_s11 = sadd.s32 1, %s715_s11   ;;  %s829_s9 = smov %s711_s10 }
 0x138   : > { %p9_p5 = scmp.ge.s32.totalorder %s12_s11, 4   ;;  %s830_s10 = smov %s832_s12 }
 0x13a   :  { %11 = sbr.rel (!%p9_p5) target bundleno = 2 (0x2), region = 69 }

// kernel: _lambda_.8
= control target key start
LH: loop header
LB: loop body
LE: loop exit
PB: predicated region body
PF: predicated region fallthrough
CT: control target
= control target key end

     0   :  { %s969_s9 = smov 0   ;;  %s971_s10 = smov 0   ;;  %s1106_s0 = inlined_call_operand.vmem [shape: bf16[2,16,512], index: 0, kind: input, shape index: {}]   ;;  %s1107_s1 = inlined_call_operand.vmem [shape: bf16[512,128], index: 1, kind: input, shape index: {}]   ;;  %s1108_s2 = inlined_call_operand.vmem [shape: bf16[2,16,128], index: 2, kind: output, shape index: {}]  }
   0x1   :  { %s973_s11 = smov 0  }
   0x2 LB: > { %s31_s12 = sadd.s32 1, %s948_s10  ;;  %p768_p0 = scmp.ge.s32.totalorder %s952_s11, 1  ;;  %s952_s11 = sphi %s973_s11, %s12_s11   ;;  %s948_s10 = sphi %s971_s10, %s1110_s10   ;;  %s944_s9 = sphi %s969_s9, %s1109_s9  }
   0x3   : > { %p33_p1 = scmp.ge.s32.totalorder %s31_s12, 2  ;;  %p159_p2 = scmp.lt.s32.totalorder %s952_s11, 3 }
   0x5   : > { %s1112_s12 = smov (%p33_p1, %s31_s12), 0  ;;  %p160_p3 = pnand %p768_p0, %p159_p2 }
   0x6   : > { %v890_v0 = vld [vmem:[%s1107_s1 + $0x40] sm:$0xff] (!%p160_p3)   ;;  %v894_v4 = vld [vmem:[%s1107_s1 + $0x48] sm:$0xff] (!%p160_p3)   ;;  %v898_v8 = vld [vmem:[%s1107_s1 + $0x50] sm:$0xff] (!%p160_p3)   ;;  %p201_p4 = scmp.lt.s32.totalorder (!%p160_p3), %s944_s9, 1 }
   0x7   : > { %163 = sbr.rel (%p160_p3) target bundleno = 304 (0x130), region = 28  ;;  %v891_v1 = vld [vmem:[%s1107_s1 + $0xc0] sm:$0xff] (!%p160_p3)   ;;  %822 = vmatprep.subr.bf16.mxu0 (!%p160_p3), %v890_v0  ;;  %v895_v5 = vld [vmem:[%s1107_s1 + $0xc8] sm:$0xff] (!%p160_p3)   ;;  %v899_v9 = vld [vmem:[%s1107_s1 + $0xd0] sm:$0xff] (!%p160_p3)  }
   0x8   : > { %v892_v2 = vld [vmem:[%s1107_s1] sm:$0xff] (!%p160_p3)   ;;  %844 = vmatprep.subr.bf16.mxu1 (!%p160_p3), %v891_v1  ;;  %v896_v6 = vld [vmem:[%s1107_s1 + $0x8] sm:$0xff] (!%p160_p3)   ;;  %v900_v10 = vld [vmem:[%s1107_s1 + $0x10] sm:$0xff] (!%p160_p3)  }
   0x9   : > { %v893_v3 = vld [vmem:[%s1107_s1 + $0x80] sm:$0xff] (!%p160_p3)   ;;  %823 = vmatpush3.bf16.msra.mxu0 (!%p160_p3), %v892_v2  ;;  %v897_v7 = vld [vmem:[%s1107_s1 + $0x88] sm:$0xff] (!%p160_p3)   ;;  %v901_v11 = vld [vmem:[%s1107_s1 + $0x90] sm:$0xff] (!%p160_p3)  }
   0xa   : > { %845 = vmatpush3.bf16.msra.mxu1 (!%p160_p3), %v893_v3  ;;  %824 = vmatprep.subr.bf16.mxu0 (!%p160_p3), %v894_v4  ;;  %v902_v12 = vld [vmem:[%s1107_s1 + $0x58] sm:$0xff] (!%p160_p3)   ;;  %v906_v16 = vld [vmem:[%s1107_s1 + $0x60] sm:$0xff] (!%p160_p3)   ;;  %v910_v20 = vld [vmem:[%s1107_s1 + $0x68] sm:$0xff] (!%p160_p3)  }
   0xb   : > { %846 = vmatprep.subr.bf16.mxu1 (!%p160_p3), %v895_v5  ;;  %v903_v13 = vld [vmem:[%s1107_s1 + $0xd8] sm:$0xff] (!%p160_p3)   ;;  %v907_v17 = vld [vmem:[%s1107_s1 + $0xe0] sm:$0xff] (!%p160_p3)   ;;  %v911_v21 = vld [vmem:[%s1107_s1 + $0xe8] sm:$0xff] (!%p160_p3)  }
   0xc   : > { %v904_v14 = vld [vmem:[%s1107_s1 + $0x18] sm:$0xff] (!%p160_p3)   ;;  %v908_v18 = vld [vmem:[%s1107_s1 + $0x20] sm:$0xff] (!%p160_p3)   ;;  %v912_v22 = vld [vmem:[%s1107_s1 + $0x28] sm:$0xff] (!%p160_p3)  }
   0xd   : > { %825 = vmatpush3.bf16.msra.mxu0 (!%p160_p3), %v896_v6  ;;  %v905_v15 = vld [vmem:[%s1107_s1 + $0x98] sm:$0xff] (!%p160_p3)   ;;  %v909_v19 = vld [vmem:[%s1107_s1 + $0xa0] sm:$0xff] (!%p160_p3)   ;;  %v913_v23 = vld [vmem:[%s1107_s1 + $0xa8] sm:$0xff] (!%p160_p3)  }
   0xe   : > { %847 = vmatpush3.bf16.msra.mxu1 %v897_v7  ;;  %826 = vmatprep.subr.bf16.mxu0 %v898_v8  ;;  %s1114_s9 = smov (!%p201_p4, %s944_s9), 1  ;;  %v914_v24 = vld [vmem:[%s1107_s1 + $0x70] sm:$0xff]   ;;  %v918_v28 = vld [vmem:[%s1107_s1 + $0x78] sm:$0xff]  }
   0xf   : > { %848 = vmatprep.subr.bf16.mxu1 %v899_v9  ;;  %v915_v25 = vld [vmem:[%s1107_s1 + $0xf0] sm:$0xff]   ;;  %s813_s19 = sshll.u32 %s1114_s9, 5  ;;  %v919_v29 = vld [vmem:[%s1107_s1 + $0xf8] sm:$0xff]   ;;  %s814_s5 = sshll.u32 %s1114_s9, 3 }
  0x10   : > { %v916_v26 = vld [vmem:[%s1107_s1 + $0x30] sm:$0xff]   ;;  %s212_s28 = scalar_lea.vmem %s1106_s0, %s813_s19  ;;  %v920_v30 = vld [vmem:[%s1107_s1 + $0x38] sm:$0xff]   ;;  %s229_s8 = scalar_lea.vmem %s1108_s2, %s814_s5 }
  0x11   : > { %827 = vmatpush3.bf16.msra.mxu0 %v900_v10  ;;  %v917_v27 = vld [vmem:[%s1107_s1 + $0xb0] sm:$0xff]   ;;  %v921_v31 = vld [vmem:[%s1107_s1 + $0xb8] sm:$0xff]  }
  0x12   : > { %849 = vmatpush3.bf16.msra.mxu1 %v901_v11  ;;  %828 = vmatprep.subr.bf16.mxu0 %v902_v12  ;;  %v922_v32 = vld [vmem:[%s212_s28] ss:$16 sps:$4 sm:$0xff]   ;;  %v924_v33 = vld [vmem:[%s212_s28 + $0x4] ss:$16 sps:$4 sm:$0xff]   ;;  %v925_v34 = vld [vmem:[%s212_s28 + $0x8] ss:$16 sps:$4 sm:$0xff]  }
  0x13   : > { %850 = vmatprep.subr.bf16.mxu1 %v903_v13  ;;  %v927_v35 = vld [vmem:[%s212_s28 + $0xc] ss:$16 sps:$4 sm:$0xff]   ;;  %552 = vmatprep.mubr.bf16.mxu0 %v924_v33 }
  0x14   : > { %593 = vmatprep.mubr.bf16.mxu1 %v927_v35 }
  0x15   : > { %829 = vmatpush3.bf16.msra.mxu0 %v904_v14 }
  0x16   : > { %851 = vmatpush3.bf16.msra.mxu1 %v905_v15  ;;  %830 = vmatprep.subr.bf16.mxu0 %v906_v16 }
  0x17   : > { %852 = vmatprep.subr.bf16.mxu1 %v907_v17 }
  0x19   : > { %831 = vmatpush3.bf16.msra.mxu0 %v908_v18 }
  0x1a   : > { %853 = vmatpush3.bf16.msra.mxu1 %v909_v19  ;;  %832 = vmatprep.subr.bf16.mxu0 %v910_v20 }
  0x1b   : > { %854 = vmatprep.subr.bf16.mxu1 %v911_v21 }
  0x1d   : > { %833 = vmatpush3.bf16.msra.mxu0 %v912_v22 }
  0x1e   : > { %855 = vmatpush3.bf16.msra.mxu1 %v913_v23  ;;  %834 = vmatprep.subr.bf16.mxu0 %v914_v24 }
  0x1f   : > { %856 = vmatprep.subr.bf16.mxu1 %v915_v25 }
  0x21   : > { %835 = vmatpush3.bf16.msra.mxu0 %v916_v26 }
  0x22   : > { %857 = vmatpush3.bf16.msra.mxu1 %v917_v27  ;;  %836 = vmatprep.subr.bf16.mxu0 %v918_v28 }
  0x23   : > { %858 = vmatprep.subr.bf16.mxu1 %v919_v29 }
  0x25   : > { %837 = vmatpush3.bf16.msra.mxu0 %v920_v30 }
  0x26   : > { %859 = vmatpush3.bf16.msra.mxu1 %v921_v31 }
  0x28   : > { %553 = vmatmul.mubr.bf16.vlgmr.msra.gmra.mrb[0].mxu0 %v922_v32 }
  0x29   : > { %594 = vmatmul.mubr.bf16.vlgmr.msra.gmra.mrb[0].mxu1 %v925_v34 }
  0xfb   : > { %v838_v36 = vpop.f32.mrb[0].mxu0 }
  0xfc   : > { %v860_v37 = vpop.f32.mrb[0].mxu1  ;;  %v839_v38 = vpop.f32.mrb[1].mxu0 }
  0xfd   : > { %v840_v39 = vadd.f32 %v839_v38, %v838_v36  ;;  %v861_v40 = vpop.f32.mrb[1].mxu1  ;;  %v841_v41 = vpop.f32.mrb[2].mxu0 }
  0xfe   : > { %v862_v42 = vadd.f32 %v861_v40, %v860_v37  ;;  %v863_v43 = vpop.f32.mrb[2].mxu1  ;;  %v842_v44 = vpop.f32.mrb[3].mxu0 }
  0xff   : > { %v843_v45 = vadd.f32 %v842_v44, %v841_v41  ;;  %v864_v46 = vpop.f32.mrb[3].mxu1 }
 0x100   : > { %v596_v47 = vadd.f32 %v862_v42, %v840_v39  ;;  %v865_v48 = vadd.f32 %v864_v46, %v863_v43 }
 0x102   : > { %v599_v49 = vadd.f32 %v865_v48, %v843_v45  ;;  %v619_v50 = vmul.f32 %v596_v47, %v596_v47 }
 0x104   : > { %v611_v51 = vadd.f32 %v599_v49, %v596_v47  ;;  %v620_v52 = vmul.f32 %v599_v49, %v599_v49 }
 0x106   : > { %v612_v53 = vrot.slane %v611_v51, 4  ;;  %v621_v54 = vadd.f32 %v620_v52, %v619_v50 }
 0x108   : > { %v613_v55 = vadd.f32 %v612_v53, %v611_v51  ;;  %v622_v56 = vrot.slane %v621_v54, 4 }
 0x10a   : > { %v614_v57 = vrot.slane %v613_v55, 2  ;;  %v623_v58 = vadd.f32 %v622_v56, %v621_v54 }
 0x10c   : > { %v615_v59 = vadd.f32 %v614_v57, %v613_v55  ;;  %v624_v60 = vrot.slane %v623_v58, 2 }
 0x10e   : > { %v616_v61 = vrot.slane %v615_v59, 1  ;;  %v625_v62 = vadd.f32 %v624_v60, %v623_v58 }
 0x110   : > { %v617_v63 = vadd.f32 %v616_v61, %v615_v59  ;;  %v626_v0 = vrot.slane %v625_v62, 1 }
 0x112   : > { %v618_v1 = vmul.f32 0.11111111, %v617_v63  ;;  %v627_v2 = vadd.f32 %v626_v0, %v625_v62 }
 0x114   : > { %v628_v3 = vmul.f32 0.11111111, %v627_v2  ;;  %v629_v4 = vmul.f32 %v618_v1, %v618_v1  ;;  %v632_v5 = vsub.f32 %v596_v47, %v618_v1  ;;  %v633_v6 = vsub.f32 %v599_v49, %v618_v1 }
 0x116   : > { %v630_v7 = vsub.f32 %v628_v3, %v629_v4 }
 0x118   : > { %v631_v8 = vmax.f32 %v630_v7, 0.0 }
 0x11a   : > { %v634_v9 = vadd.f32 1e-05, %v631_v8 }
 0x11c   : > { %928 = vrsqrt.f32 %v634_v9 }
 0x126   : > { %v929_v10 = vpop.eup %928 }
 0x127   : > { %v636_v11 = vmul.f32 %v929_v10, %v632_v5  ;;  %v637_v12 = vmul.f32 %v929_v10, %v633_v6 }
 0x129   : > { %v638_v13 = vmul.f32 0.01, %v636_v11  ;;  %v639_v14 = vmul.f32 0.01, %v637_v12 }
 0x12b   : > { %v640_v15 = vmax.f32 %v636_v11, %v638_v13  ;;  %v641_v16 = vmax.f32 %v637_v12, %v639_v14 }
 0x12d   : > { %v820_v17 = vpack.c.bf16 %v641_v16, %v640_v15 }
 0x12f   : > { %821 = vst [vmem:[%s229_s8] sm:$0xff] %v820_v17  }
 0x130 PF: > { %s12_s11 = sadd.s32 1, %s952_s11   ;;  %s1109_s9 = smov %s948_s10 }
 0x131   : > { %p9_p5 = scmp.ge.s32.totalorder %s12_s11, 4   ;;  %s1110_s10 = smov %s1112_s12 }
 0x133   :  { %11 = sbr.rel (!%p9_p5) target bundleno = 2 (0x2), region = 69 }

// kernel: _lambda_.9
= control target key start
LH: loop header
LB: loop body
LE: loop exit
PB: predicated region body
PF: predicated region fallthrough
CT: control target
= control target key end

     0   :  { %s967_s14 = smov 0   ;;  %s969_s15 = smov 0   ;;  %s1068_s0 = inlined_call_operand.vmem [shape: bf16[2,8,1024], index: 0, kind: input, shape index: {}]   ;;  %s1069_s1 = inlined_call_operand.vmem [shape: bf16[1024,1], index: 1, kind: input, shape index: {}]   ;;  %s1070_s2 = inlined_call_operand.<no memory space> [shape: f32[1,1], index: 2, kind: input, shape index: {}]   ;;  %s1071_s3 = inlined_call_operand.vmem [shape: f32[2,8,1], index: 3, kind: output, shape index: {}]  }
   0x1   :  { %v8_v0 = vstv %s1070_s2  ;;  %s971_s16 = smov 0   ;;  %s973_s17 = smov 0  }
   0x2   :  { %9 = vst [vmem:[#allocation3] sm:$0x1] %v8_v0  ;;  %s975_s18 = smov 0  }
   0x3 LB: > { %s27_s2 = sadd.s32 1, %s933_s16  ;;  %s34_s19 = sadd.s32 1, %s937_s17  ;;  %s941_s18 = sphi %s975_s18, %s15_s18   ;;  %s937_s17 = sphi %s973_s17, %s1075_s17   ;;  %s933_s16 = sphi %s971_s16, %s1074_s16   ;;  %s929_s15 = sphi %s969_s15, %s1073_s15   ;;  %s925_s14 = sphi %s967_s14, %s1072_s14  }
   0x4   : > { %p28_p0 = scmp.ge.s32.totalorder %s27_s2, 2  ;;  %p734_p1 = scmp.ge.s32.totalorder %s941_s18, 1 }
   0x5   : > { %p184_p2 = scmp.lt.s32.totalorder %s941_s18, 5 }
   0x6   : > { %s1077_s2 = smov (%p28_p0, %s27_s2), 0  ;;  %s1079_s19 = smov (!%p28_p0, %s34_s19), %s937_s17 }
   0x7   : > { %p185_p3 = pnand %p734_p1, %p184_p2  ;;  %p36_p4 = scmp.ge.s32.totalorder %s1079_s19, 2 }
   0x8   : > { %s735_s20 = sshll.u32 (!%p185_p3), %s925_s14, 2  ;;  %p224_p5 = scmp.lt.s32.totalorder (!%p185_p3), %s929_s15, 1 }
   0x9   : > { %s1081_s19 = smov (%p36_p4, %s1079_s19), 0  ;;  %188 = sbr.rel (%p185_p3) target bundleno = 297 (0x129), region = 32 }
   0xa   : > { %p228_p6 = scmp.lt.s32.totalorder (!%p185_p3), %s735_s20, 7  ;;  %s738_s21 = sshll.u32 (!%p185_p3), %s925_s14, 6 }
   0xb   : > { %p238_p7 = scmp.lt.s32.totalorder (!%p185_p3), %s738_s21, 127  ;;  %p741_p8 = scmp.ne.s32.totalorder (!%p185_p3), %s925_s14, 0 }
  0x10   : > { %s1083_s15 = smov (!%p224_p5, %s929_s15), 1  ;;  %s1085_s20 = smov (!%p228_p6, %s735_s20), 7 }
  0x11   : > { %s736_s22 = sshll.u32 %s1083_s15, 3  ;;  %s1087_s21 = smov (!%p238_p7, %s738_s21), 127  ;;  %vm255_vm0 = vcmask (!%p741_p8), 7168   ;;  %v943_v1 = vmov (!%p741_p8), 0.0  }
  0x12   : > { %s233_s23 = sadd.s32 %s736_s22, %s1085_s20  ;;  %s1004_s26 = scalar_lea.vmem %s1071_s3, %s736_s22  ;;  %256 = vst.msk [vmem:[#allocation2] sm:$0xff] (!%p741_p8), %vm255_vm0, %v943_v1 }
  0x13   : > { %s737_s27 = sshll.u32 %s233_s23, 2  ;;  %s739_s4 = sshll.u32 %s1087_s21, 2 }
  0x14   : > { %s1009_s30 = scalar_lea.vmem %s1068_s0, %s737_s27  ;;  %s1014_s7 = scalar_lea.vmem %s1069_s1, %s739_s4 }
  0x15   : > { %254 = sbr.rel (%p741_p8) target bundleno = 28 (0x1c), region = 36 }
  0x1c PF: > { %v867_v2 = vld [vmem:[%s1014_s7 + $0x40] sm:$0xff]   ;;  %v871_v6 = vld [vmem:[%s1014_s7 + $0x48] sm:$0xff]   ;;  %v875_v10 = vld [vmem:[%s1014_s7 + $0x50] sm:$0xff]   ;;  %vm611_vm1 = vcmask 7168   ;;  %p778_p9 = scmp.ne.s32.totalorder %s925_s14, 1 }
  0x1d   : > { %v868_v3 = vld [vmem:[%s1014_s7 + $0xc0] sm:$0xff]   ;;  %782 = vmatprep.subr.bf16.mxu0 %v867_v2  ;;  %v872_v7 = vld [vmem:[%s1014_s7 + $0xc8] sm:$0xff]   ;;  %v876_v11 = vld [vmem:[%s1014_s7 + $0xd0] sm:$0xff]  }
  0x1e   : > { %v869_v4 = vld [vmem:[%s1014_s7] sm:$0xff]   ;;  %804 = vmatprep.subr.bf16.mxu1 %v868_v3  ;;  %v873_v8 = vld [vmem:[%s1014_s7 + $0x8] sm:$0xff]   ;;  %v877_v12 = vld [vmem:[%s1014_s7 + $0x10] sm:$0xff]  }
  0x1f   : > { %v870_v5 = vld [vmem:[%s1014_s7 + $0x80] sm:$0xff]   ;;  %783 = vmatpush3.bf16.msra.mxu0 %v869_v4  ;;  %v874_v9 = vld [vmem:[%s1014_s7 + $0x88] sm:$0xff]   ;;  %v878_v13 = vld [vmem:[%s1014_s7 + $0x90] sm:$0xff]  }
  0x20   : > { %805 = vmatpush3.bf16.msra.mxu1 %v870_v5  ;;  %784 = vmatprep.subr.bf16.mxu0 %v871_v6  ;;  %v879_v14 = vld [vmem:[%s1014_s7 + $0x58] sm:$0xff]   ;;  %v883_v18 = vld [vmem:[%s1014_s7 + $0x60] sm:$0xff]   ;;  %v887_v22 = vld [vmem:[%s1014_s7 + $0x68] sm:$0xff]  }
  0x21   : > { %806 = vmatprep.subr.bf16.mxu1 %v872_v7  ;;  %v880_v15 = vld [vmem:[%s1014_s7 + $0xd8] sm:$0xff]   ;;  %v884_v19 = vld [vmem:[%s1014_s7 + $0xe0] sm:$0xff]   ;;  %v888_v23 = vld [vmem:[%s1014_s7 + $0xe8] sm:$0xff]  }
  0x22   : > { %v881_v16 = vld [vmem:[%s1014_s7 + $0x18] sm:$0xff]   ;;  %v885_v20 = vld [vmem:[%s1014_s7 + $0x20] sm:$0xff]   ;;  %v889_v24 = vld [vmem:[%s1014_s7 + $0x28] sm:$0xff]  }
  0x23   : > { %785 = vmatpush3.bf16.msra.mxu0 %v873_v8  ;;  %v882_v17 = vld [vmem:[%s1014_s7 + $0x98] sm:$0xff]   ;;  %v886_v21 = vld [vmem:[%s1014_s7 + $0xa0] sm:$0xff]   ;;  %v890_v25 = vld [vmem:[%s1014_s7 + $0xa8] sm:$0xff]  }
  0x24   : > { %807 = vmatpush3.bf16.msra.mxu1 %v874_v9  ;;  %786 = vmatprep.subr.bf16.mxu0 %v875_v10  ;;  %v891_v26 = vld [vmem:[%s1014_s7 + $0x70] sm:$0xff]   ;;  %v895_v30 = vld [vmem:[%s1014_s7 + $0x78] sm:$0xff]   ;;  %v258_v34 = vld [vmem:[%s1009_s30] sm:$0xff] }
  0x25   : > { %808 = vmatprep.subr.bf16.mxu1 %v876_v11  ;;  %v892_v27 = vld [vmem:[%s1014_s7 + $0xf0] sm:$0xff]   ;;  %v896_v31 = vld [vmem:[%s1014_s7 + $0xf8] sm:$0xff]   ;;  %v259_v35 = vld [vmem:[%s1009_s30 + $0x8] sm:$0xff]  ;;  %v742_v36 = vcombine.low %v258_v34, %v258_v34  ;;  %v743_v37 = vcombine.high %v258_v34, %v258_v34 }
  0x26   : > { %v893_v28 = vld [vmem:[%s1014_s7 + $0x30] sm:$0xff]   ;;  %v897_v32 = vld [vmem:[%s1014_s7 + $0x38] sm:$0xff]   ;;  %v744_v38 = vcombine.low %v259_v35, %v259_v35  ;;  %v745_v39 = vcombine.high %v259_v35, %v259_v35  ;;  %v257_v48 = vld [vmem:[#allocation2] sm:$0xff] }
  0x27   : > { %787 = vmatpush3.bf16.msra.mxu0 %v877_v12  ;;  %v894_v29 = vld [vmem:[%s1014_s7 + $0xb0] sm:$0xff]   ;;  %v898_v33 = vld [vmem:[%s1014_s7 + $0xb8] sm:$0xff]   ;;  %562 = vmatprep.mubr.bf16.mxu0 %v743_v37  ;;  %v779_v54 = vld [vmem:[#allocation3] ss:$0 sm:$0xff] (!%p778_p9) }
  0x28   : > { %809 = vmatpush3.bf16.msra.mxu1 %v878_v13  ;;  %788 = vmatprep.subr.bf16.mxu0 %v879_v14 }
  0x29   : > { %810 = vmatprep.subr.bf16.mxu1 %v880_v15  ;;  %602 = vmatprep.mubr.bf16.mxu1 %v745_v39 }
  0x2b   : > { %789 = vmatpush3.bf16.msra.mxu0 %v881_v16 }
  0x2c   : > { %811 = vmatpush3.bf16.msra.mxu1 %v882_v17  ;;  %790 = vmatprep.subr.bf16.mxu0 %v883_v18 }
  0x2d   : > { %812 = vmatprep.subr.bf16.mxu1 %v884_v19 }
  0x2f   : > { %791 = vmatpush3.bf16.msra.mxu0 %v885_v20 }
  0x30   : > { %813 = vmatpush3.bf16.msra.mxu1 %v886_v21  ;;  %792 = vmatprep.subr.bf16.mxu0 %v887_v22 }
  0x31   : > { %814 = vmatprep.subr.bf16.mxu1 %v888_v23 }
  0x33   : > { %793 = vmatpush3.bf16.msra.mxu0 %v889_v24 }
  0x34   : > { %815 = vmatpush3.bf16.msra.mxu1 %v890_v25  ;;  %794 = vmatprep.subr.bf16.mxu0 %v891_v26 }
  0x35   : > { %816 = vmatprep.subr.bf16.mxu1 %v892_v27 }
  0x37   : > { %795 = vmatpush3.bf16.msra.mxu0 %v893_v28 }
  0x38   : > { %817 = vmatpush3.bf16.msra.mxu1 %v894_v29  ;;  %796 = vmatprep.subr.bf16.mxu0 %v895_v30 }
  0x39   : > { %818 = vmatprep.subr.bf16.mxu1 %v896_v31 }
  0x3b   : > { %797 = vmatpush3.bf16.msra.mxu0 %v897_v32 }
  0x3c   : > { %819 = vmatpush3.bf16.msra.mxu1 %v898_v33 }
  0x3e   : > { %563 = vmatmul.mubr.bf16.vlgmr.msra.gmra.mrb[0].mxu0 %v742_v36 }
  0x3f   : > { %603 = vmatmul.mubr.bf16.vlgmr.msra.gmra.mrb[0].mxu1 %v744_v38 }
 0x111   : > { %v798_v40 = vpop.f32.mrb[0].mxu0 }
 0x112   : > { %v820_v41 = vpop.f32.mrb[0].mxu1  ;;  %v799_v42 = vpop.f32.mrb[1].mxu0 }
 0x113   : > { %v821_v43 = vpop.f32.mrb[1].mxu1  ;;  %v800_v44 = vadd.f32 %v799_v42, %v798_v40  ;;  %v801_v46 = vpop.f32.mrb[2].mxu0 }
 0x114   : > { %v822_v45 = vadd.f32 %v821_v43, %v820_v41  ;;  %v823_v47 = vpop.f32.mrb[2].mxu1  ;;  %v802_v49 = vpop.f32.mrb[3].mxu0  ;;  %616 = sbr.rel (%p778_p9) target bundleno = 297 (0x129), region = 40 }
 0x115   : > { %v824_v50 = vpop.f32.mrb[3].mxu1 }
 0x116   : > { %v605_v51 = vadd.f32 %v822_v45, %v800_v44 }
 0x118   : > { %v610_v52 = vadd.f32 %v605_v51, %v257_v48 }
 0x11a   : > { %612 = vst.msk [vmem:[#allocation2] sm:$0xff] %vm611_vm1, %v610_v52 }
 0x121   : > { %v617_v53 = vld [vmem:[#allocation2] sm:$0xff] }
 0x122   : > { %v625_v55 = vadd.f32 %v779_v54, %v617_v53 }
 0x124   : > { %v626_v56 = vmul.f32 0.01, %v625_v55 }
 0x126   : > { %v627_v57 = vmax.f32 %v625_v55, %v626_v56 }
 0x128   : > { %628 = vst.msk [vmem:[%s1004_s26] sm:$0xff] %vm611_vm1, %v627_v57 }
 0x129 PF: > { %s15_s18 = sadd.s32 1, %s941_s18   ;;  %s1072_s14 = smov %s933_s16 }
 0x12a   : > { %p12_p10 = scmp.ge.s32.totalorder %s15_s18, 6   ;;  %s1073_s15 = smov %s937_s17 }
 0x12b   : > { %s1074_s16 = smov %s1077_s2  ;;  %s1075_s17 = smov %s1081_s19 }
 0x12c   :  { %14 = sbr.rel (!%p12_p10) target bundleno = 3 (0x3), region = 73 }

</bundles_post_ra>
